<compile_context>
chip_gen: v6e
topology: v6e:2x2x1
jax: 0.10.0
libtpu: 0.0.40
codegen_flags: <defaults>
</compile_context>

<pallas_src>
import functools

import jax
import jax.numpy as jnp
from jax.experimental import pallas as pl
from jax.experimental.pallas import tpu as pltpu

_BN_EPS = 1e-5
# Actual per-step footprint here is well under 1 MiB; size this per feature-map
# generation for production shapes (<= ~48 MiB on v7x).
_VMEM_LIMIT = 32 * 1024 * 1024


def _row_tile(h):
    """Row-tile height: prefer the bf16-native 16, then 8, else the full H."""
    for th in (16, 8):
        if h % th == 0:
            return th
    return h


# ---------------------------------------------------------------------------
# Kernels
# ---------------------------------------------------------------------------
def _conv_rows_kernel(x_ref, w_ref, z_ref, mom_ref, *, th):
    """3x3 conv (pre-BN) on one row tile, packed (rows, W*C) layout.

    x_ref  : (H+2, W*Cin) bf16, zero halo row at top/bottom.
    w_ref  : (3*W*Cin, W*Cout) bf16 block-tridiagonal weights (kx taps + W-halo
             baked in, see _pack_conv_weights).
    z_ref  : (TH, W*Cout) bf16 pre-BN conv output for this tile.
    mom_ref: (2, W*Cout) f32 per-tile partial [sum; sum of squares] over rows.
    """
    t = pl.program_id(1)
    r0 = pl.multiple_of(t * th, 8)
    x = x_ref[pl.ds(r0, th + 2), :]                       # (TH+2, W*Cin) bf16
    # Only the three ky row-slices remain; kx shifts live in the weights.
    patch = jnp.concatenate([x[0:th], x[1:th + 1], x[2:th + 2]], axis=1)
    z = jnp.dot(patch, w_ref[...], preferred_element_type=jnp.float32)
    z_ref[...] = z.astype(z_ref.dtype)
    # Per-tile partial moments (rows only; the W/tile reduction is a tiny
    # wrapper op).  TH<=16 rows, so a plain sublane reduction is cheapest.
    mom_ref[...] = jnp.concatenate(
        [jnp.sum(z, axis=0, keepdims=True),
         jnp.sum(z * z, axis=0, keepdims=True)], axis=0)


def _bn_elu_conv_rows_kernel(z1_ref, s_ref, b_ref, w_ref, z_ref, mom_ref,
                             *, th, h):
    """BN1 (precomputed scale/shift) + ELU + 3x3 conv2 on one row tile."""
    t = pl.program_id(1)
    r0 = pl.multiple_of(t * th, 8)
    z1 = z1_ref[pl.ds(r0, th + 2), :].astype(jnp.float32)  # (TH+2, W*C1)
    a = z1 * s_ref[...] + b_ref[...]
    a = jnp.where(a > 0.0, a, jnp.exp(jnp.minimum(a, 0.0)) - 1.0)   # ELU
    # Rows that fall on the zero-pad rows of z1_p must stay zero in
    # *activation* space (conv2's zero halo), not become ELU(shift).
    gr = r0 + jax.lax.broadcasted_iota(jnp.int32, (th + 2, 1), 0)
    a = jnp.where((gr >= 1) & (gr <= h), a, 0.0)
    a = a.astype(jnp.bfloat16)
    patch = jnp.concatenate([a[0:th], a[1:th + 1], a[2:th + 2]], axis=1)
    z = jnp.dot(patch, w_ref[...], preferred_element_type=jnp.float32)
    z_ref[...] = z.astype(z_ref.dtype)
    mom_ref[...] = jnp.concatenate(
        [jnp.sum(z, axis=0, keepdims=True),
         jnp.sum(z * z, axis=0, keepdims=True)], axis=0)


def _bn_elu_kernel(z_ref, s_ref, b_ref, o_ref):
    """Final BN2 (precomputed scale/shift) + ELU, lane-dense elementwise."""
    y = z_ref[...].astype(jnp.float32) * s_ref[...] + b_ref[...]
    o_ref[...] = jnp.where(y > 0.0, y, jnp.exp(jnp.minimum(y, 0.0)) - 1.0)


# ---------------------------------------------------------------------------
# pallas_call wrappers
# ---------------------------------------------------------------------------
def _cparams():
    return pltpu.CompilerParams(
        dimension_semantics=("parallel", "parallel"),
        vmem_limit_bytes=_VMEM_LIMIT)


def _conv_pass(xp, wbd, th):
    """Pass 1: conv1 over row tiles; returns (z1 bf16, per-tile moments f32)."""
    B, HP, L_in = xp.shape
    H = HP - 2
    nT = H // th
    L_out = wbd.shape[1]
    flops = int(2 * B * H * (3 * L_in) * L_out)
    bytes_acc = int(xp.size * 2 + wbd.size * 2 + B * H * L_out * 2
                    + B * nT * 2 * L_out * 4)
    return pl.pallas_call(
        functools.partial(_conv_rows_kernel, th=th),
        grid=(B, nT),
        in_specs=[
            pl.BlockSpec((None, HP, L_in), lambda b, t: (b, 0, 0)),   # resident
            pl.BlockSpec((3 * L_in, L_out), lambda b, t: (0, 0)),     # weights
        ],
        out_specs=(
            pl.BlockSpec((None, th, L_out), lambda b, t: (b, t, 0)),
            pl.BlockSpec((None, None, 2, L_out), lambda b, t: (b, t, 0, 0)),
        ),
        out_shape=(
            jax.ShapeDtypeStruct((B, H, L_out), jnp.bfloat16),
            jax.ShapeDtypeStruct((B, nT, 2, L_out), jnp.float32),
        ),
        compiler_params=_cparams(),
        cost_estimate=pl.CostEstimate(flops=flops, transcendentals=0,
                                      bytes_accessed=bytes_acc),
    )(xp, wbd)


def _bn_elu_conv_pass(z1p, s1, b1, wbd, th):
    """Pass 2: BN1 + ELU + conv2; returns (z2 bf16, per-tile moments f32)."""
    B, HP, L1 = z1p.shape
    H = HP - 2
    nT = H // th
    L2 = wbd.shape[1]
    flops = int(2 * B * H * (3 * L1) * L2 + 3 * B * HP * L1)
    bytes_acc = int(z1p.size * 2 + wbd.size * 2 + 2 * L1 * 4 * 2
                    + B * H * L2 * 2 + B * nT * 2 * L2 * 4)
    return pl.pallas_call(
        functools.partial(_bn_elu_conv_rows_kernel, th=th, h=H),
        grid=(B, nT),
        in_specs=[
            pl.BlockSpec((None, HP, L1), lambda b, t: (b, 0, 0)),     # resident
            pl.BlockSpec((1, L1), lambda b, t: (0, 0)),               # scale1
            pl.BlockSpec((1, L1), lambda b, t: (0, 0)),               # shift1
            pl.BlockSpec((3 * L1, L2), lambda b, t: (0, 0)),          # weights
        ],
        out_specs=(
            pl.BlockSpec((None, th, L2), lambda b, t: (b, t, 0)),
            pl.BlockSpec((None, None, 2, L2), lambda b, t: (b, t, 0, 0)),
        ),
        out_shape=(
            jax.ShapeDtypeStruct((B, H, L2), jnp.bfloat16),
            jax.ShapeDtypeStruct((B, nT, 2, L2), jnp.float32),
        ),
        compiler_params=_cparams(),
        cost_estimate=pl.CostEstimate(flops=flops,
                                      transcendentals=int(B * HP * L1),
                                      bytes_accessed=bytes_acc),
    )(z1p, s1, b1, wbd)


def _bn_elu_pass(z2, s2, b2, th):
    """Pass 3: BN2 + ELU (elementwise, lane-dense)."""
    B, H, L = z2.shape
    nT = H // th
    return pl.pallas_call(
        _bn_elu_kernel,
        grid=(B, nT),
        in_specs=[
            pl.BlockSpec((None, th, L), lambda b, t: (b, t, 0)),
            pl.BlockSpec((1, L), lambda b, t: (0, 0)),
            pl.BlockSpec((1, L), lambda b, t: (0, 0)),
        ],
        out_specs=pl.BlockSpec((None, th, L), lambda b, t: (b, t, 0)),
        out_shape=jax.ShapeDtypeStruct((B, H, L), jnp.float32),
        compiler_params=_cparams(),
        cost_estimate=pl.CostEstimate(flops=int(3 * B * H * L),
                                      transcendentals=int(B * H * L),
                                      bytes_accessed=int(B * H * L * 6)),
    )(z2, s2, b2)


# ---------------------------------------------------------------------------
# Wrapper-side helpers (tiny XLA ops)
# ---------------------------------------------------------------------------
def _pack_conv_weights(w, width):
    """(3, 3, Cin, Cout) -> block-tridiagonal (3*width*Cin, width*Cout) bf16.

    Row index = ky*(width*Cin) + x*Cin + ci (matches the lane-packed input);
    col index = x'*Cout + co (matches the lane-packed output); entry is
    w[ky, x - x' + 1, ci, co] when |x - x'| <= 1 else 0.  This bakes the kx
    taps *and* the width-direction zero padding into the matmul, so the kernel
    needs no lane shifts / masks / im2col relayouts.
    """
    cin, cout = w.shape[2], w.shape[3]
    x = jnp.arange(width)
    d = x[:, None] - x[None, :]                             # x - x'
    kx = jnp.clip(d + 1, 0, 2)
    band = (jnp.abs(d) <= 1).astype(w.dtype)
    wk = w[:, kx, :, :] * band[None, :, :, None, None]      # (3, W, W, Cin, Cout)
    wk = jnp.transpose(wk, (0, 1, 3, 2, 4))                 # (3, W, Cin, W, Cout)
    return wk.reshape(3 * width * cin, width * cout).astype(jnp.bfloat16)


def _bn_scale_shift(mom, gamma, beta, count, width):
    """Combine per-tile partial moments into packed BN scale/shift vectors."""
    c = gamma.shape[0]
    s = mom.sum(axis=(0, 1)).reshape(2, width, c).sum(axis=1)    # (2, C)
    mean = s[0] / count
    var = jnp.maximum(s[1] / count - mean * mean, 0.0)           # biased (train)
    scale = gamma * jax.lax.rsqrt(var + _BN_EPS)
    shift = beta - mean * scale
    # Broadcast per-channel vectors to the packed (W*C) lane layout.
    return (jnp.tile(scale, width)[None, :].astype(jnp.float32),
            jnp.tile(shift, width)[None, :].astype(jnp.float32))


def _upsample2x_bilinear(x):
    """2x bilinear upsample, align_corners=False (half-pixel centers), NHWC."""
    def up_axis(v, axis):
        n = v.shape[axis]

        def sl(a, b):
            return jax.lax.slice_in_dim(v, a, b, axis=axis)

        prev = jnp.concatenate([sl(0, 1), sl(0, n - 1)], axis=axis)
        nxt = jnp.concatenate([sl(1, n), sl(n - 1, n)], axis=axis)
        even = 0.25 * prev + 0.75 * v
        odd = 0.75 * v + 0.25 * nxt
        out = jnp.stack([even, odd], axis=axis + 1)
        shape = list(v.shape)
        shape[axis] = 2 * n
        return out.reshape(shape)

    return up_axis(up_axis(x, 1), 2)


def init_up_params(key, in_ch_1, in_ch_2, out_ch):
    """Synthetic parameters for Up(in_ch_1, in_ch_2, out_ch).

    Conv weights stored (3, 3, Cin, Cout) f32 (packed per-resolution in the
    wrapper).  Conv biases omitted: training-mode BatchNorm subtracts the
    per-channel batch mean, so a bias cancels exactly in the forward pass.
    """
    in_ch = in_ch_1 + in_ch_2
    ks = jax.random.split(key, 6)

    def conv_w(k, cin, cout):
        scale = 1.0 / jnp.sqrt(9.0 * cin)
        return jax.random.normal(k, (3, 3, cin, cout), jnp.float32) * scale

    return {
        "w1": conv_w(ks[0], in_ch, out_ch),
        "g1": 1.0 + 0.1 * jax.random.normal(ks[1], (out_ch,), jnp.float32),
        "beta1": 0.1 * jax.random.normal(ks[2], (out_ch,), jnp.float32),
        "w2": conv_w(ks[3], out_ch, out_ch),
        "g2": 1.0 + 0.1 * jax.random.normal(ks[4], (out_ch,), jnp.float32),
        "beta2": 0.1 * jax.random.normal(ks[5], (out_ch,), jnp.float32),
    }


def up_forward(x1, x2, params):
    """Up.forward.  x1 (low-res decoder feature) and x2 (skip) are NCHW."""
    x1n = jnp.transpose(x1, (0, 2, 3, 1))
    x2n = jnp.transpose(x2, (0, 2, 3, 1))

    x1u = _upsample2x_bilinear(x1n)
    diffY = x2n.shape[1] - x1u.shape[1]
    diffX = x2n.shape[2] - x1u.shape[2]
    if diffY or diffX:   # static shapes -> trace-time branch
        x1u = jnp.pad(x1u, ((0, 0),
                            (diffY // 2, diffY - diffY // 2),
                            (diffX // 2, diffX - diffX // 2),
                            (0, 0)))
    # TODO(synk): fold the fixed 0.25/0.75 bilinear stencil into pass 1 so the
    # upsampled x1 never makes an HBM round trip (v5e HBM-bound case).

    B, H, W, C2 = x2n.shape
    C1 = x1u.shape[3]
    cin = C2 + C1
    cout = params["g1"].shape[0]
    th = _row_tile(H)
    n = float(B * H * W)

    # Channel concat + lane-dense packing (last dim W*C) + 1-row zero halo,
    # all once in the wrapper; intermediates travel as bf16.
    xcat = jnp.concatenate([x2n, x1u], axis=-1).reshape(B, H, W * cin)
    xcat = jnp.pad(xcat, ((0, 0), (1, 1), (0, 0))).astype(jnp.bfloat16)

    w1bd = _pack_conv_weights(params["w1"], W)
    w2bd = _pack_conv_weights(params["w2"], W)

    # Pass 1: conv1 (pre-BN) + per-tile partial moments.
    z1, mom1 = _conv_pass(xcat, w1bd, th)
    s1, b1 = _bn_scale_shift(mom1, params["g1"], params["beta1"], n, W)

    # Pass 2: BN1 + ELU + conv2 (pre-BN) + per-tile partial moments.
    z1p = jnp.pad(z1, ((0, 0), (1, 1), (0, 0)))
    z2, mom2 = _bn_elu_conv_pass(z1p, s1, b1, w2bd, th)
    s2, b2 = _bn_scale_shift(mom2, params["g2"], params["beta2"], n, W)

    # Pass 3: BN2 + ELU.
    y = _bn_elu_pass(z2, s2, b2, th)

    return jnp.transpose(y.reshape(B, H, W, cout), (0, 3, 1, 2))   # NCHW


def _reference_up(x1, x2, params):
    """Pure-JAX f32 reference (same bf16-rounded conv weights)."""
    x1n = jnp.transpose(x1, (0, 2, 3, 1))
    x2n = jnp.transpose(x2, (0, 2, 3, 1))
    x1u = _upsample2x_bilinear(x1n)
    diffY = x2n.shape[1] - x1u.shape[1]
    diffX = x2n.shape[2] - x1u.shape[2]
    if diffY or diffX:
        x1u = jnp.pad(x1u, ((0, 0),
                            (diffY // 2, diffY - diffY // 2),
                            (diffX // 2, diffX - diffX // 2), (0, 0)))
    x = jnp.concatenate([x2n, x1u], axis=-1)

    def stage(x, w, g, b):
        w = w.astype(jnp.bfloat16).astype(jnp.float32)
        y = jax.lax.conv_general_dilated(
            x, w, window_strides=(1, 1), padding="SAME",
            dimension_numbers=("NHWC", "HWIO", "NHWC"))
        mean = y.mean(axis=(0, 1, 2))
        var = y.var(axis=(0, 1, 2))
        y = (y - mean) * jax.lax.rsqrt(var + _BN_EPS) * g + b
        return jnp.where(y > 0, y, jnp.expm1(jnp.minimum(y, 0.0)))

    y = stage(x, params["w1"], params["g1"], params["beta1"])
    y = stage(y, params["w2"], params["g2"], params["beta2"])
    return jnp.transpose(y, (0, 3, 1, 2))


if __name__ == "__main__":
    key = jax.random.PRNGKey(0)
    k1, k2, kp = jax.random.split(key, 3)

    # Up(in_ch_1=4, in_ch_2=4, out_ch=8): x1 is the low-res decoder feature,
    # x2 the skip connection at 2x the resolution.
    in_ch_1, in_ch_2, out_ch = 4, 4, 8
    x1 = jax.random.normal(k1, (2, in_ch_1, 16, 16), jnp.float32)
    x2 = jax.random.normal(k2, (2, in_ch_2, 32, 32), jnp.float32)
    params = init_up_params(kp, in_ch_1, in_ch_2, out_ch)

    out = jax.block_until_ready(jax.jit(up_forward)(x1, x2, params))

    assert out.shape == (2, out_ch, 32, 32), out.shape
    assert out.dtype == jnp.float32
    assert bool(jnp.all(jnp.isfinite(out)))

    # Numerical check against a pure-JAX reference (bf16 intermediates in the
    # kernel path -> loose tolerance; a structural bug would show O(1) error).
    ref = _reference_up(x1, x2, params)
    err = float(jnp.max(jnp.abs(out - ref)))
    assert err < 0.2, f"max |kernel - reference| = {err}"

    print("KERNEL_OK")
</pallas_src>

<mosaic_0001>
module attributes {stable_mosaic.version = 11 : i64} {
  func.func @_conv_rows_kernel(%arg0: i32, %arg1: i32, %arg2: memref<1x34x256xbf16, #tpu.memory_space<vmem>>, %arg3: memref<768x256xbf16, #tpu.memory_space<vmem>>, %arg4: memref<1x16x256xbf16, #tpu.memory_space<vmem>>, %arg5: memref<1x1x2x256xf32, #tpu.memory_space<vmem>>) attributes {dimension_semantics = [#tpu.dimension_semantics<parallel>, #tpu.dimension_semantics<parallel>], iteration_bounds = array<i64: 2, 2>, scalar_prefetch = 0 : i64, scratch_operands = 0 : i64, tpu.core_type = #tpu.core_type<tc>, window_params = [{transform_indices = @transform_0, window_bounds = array<i64: 1, 34, 256>}, {pipeline_mode = #tpu.pipeline_mode<synchronous>, transform_indices = @transform_1, window_bounds = array<i64: 768, 256>}, {transform_indices = @transform_2, window_bounds = array<i64: 1, 16, 256>}, {transform_indices = @transform_3, window_bounds = array<i64: 1, 1, 2, 256>}]} {
    %c16_i32 = arith.constant 16 : i32
    %0 = arith.muli %arg1, %c16_i32 : i32
    %1 = tpu.assume_multiple %0, 8 : i32
    %c0 = arith.constant 0 : index
    %2 = arith.index_cast %1 : i32 to index
    %c0_0 = arith.constant 0 : index
    %3 = vector.load %arg2[%c0, %2, %c0_0] : memref<1x34x256xbf16, #tpu.memory_space<vmem>>, vector<1x18x256xbf16>
    %4 = vector.shape_cast %3 : vector<1x18x256xbf16> to vector<18x256xbf16>
    %5 = vector.extract_strided_slice %4 {offsets = [0, 0], sizes = [16, 256], strides = [1, 1]} : vector<18x256xbf16> to vector<16x256xbf16>
    %6 = vector.extract_strided_slice %4 {offsets = [1, 0], sizes = [16, 256], strides = [1, 1]} : vector<18x256xbf16> to vector<16x256xbf16>
    %7 = vector.extract_strided_slice %4 {offsets = [2, 0], sizes = [16, 256], strides = [1, 1]} : vector<18x256xbf16> to vector<16x256xbf16>
    %8 = tpu.concatenate %5, %6, %7 in 1 : vector<16x256xbf16>, vector<16x256xbf16>, vector<16x256xbf16> -> vector<16x768xbf16>
    %c0_1 = arith.constant 0 : index
    %c0_2 = arith.constant 0 : index
    %9 = vector.load %arg3[%c0_1, %c0_2] : memref<768x256xbf16, #tpu.memory_space<vmem>>, vector<768x256xbf16>
    %cst = arith.constant dense<0.000000e+00> : vector<16x256xf32>
    %10 = tpu.matmul %8, %9, %cst {dimension_numbers = #tpu.dot_dimension_numbers<[1], [0], [0], [1], [0, 0, 1, 1], [], []>} : vector<16x768xbf16>, vector<768x256xbf16>, vector<16x256xf32> -> vector<16x256xf32>
    %11 = arith.truncf %10 : vector<16x256xf32> to vector<16x256xbf16>
    %c0_3 = arith.constant 0 : index
    %c0_4 = arith.constant 0 : index
    %c0_5 = arith.constant 0 : index
    %12 = vector.load %arg4[%c0_3, %c0_4, %c0_5] : memref<1x16x256xbf16, #tpu.memory_space<vmem>>, vector<1x16x256xbf16>
    %13 = vector.shape_cast %12 : vector<1x16x256xbf16> to vector<16x256xbf16>
    %14 = vector.shape_cast %11 : vector<16x256xbf16> to vector<1x16x256xbf16>
    tpu.vector_store %arg4[%c0_3, %c0_4, %c0_5], %14 {strides = array<i32>} : memref<1x16x256xbf16, #tpu.memory_space<vmem>>, vector<1x16x256xbf16>,
    %cst_6 = arith.constant dense<0.000000e+00> : vector<256xf32>
    %15 = vector.multi_reduction <add>, %10, %cst_6 [0] : vector<16x256xf32> to vector<256xf32>
    %16 = vector.shape_cast %15 : vector<256xf32> to vector<1x256xf32>
    %17 = arith.mulf %10, %10 : vector<16x256xf32>
    %cst_7 = arith.constant dense<0.000000e+00> : vector<256xf32>
    %18 = vector.multi_reduction <add>, %17, %cst_7 [0] : vector<16x256xf32> to vector<256xf32>
    %19 = vector.shape_cast %18 : vector<256xf32> to vector<1x256xf32>
    %20 = tpu.concatenate %16, %19 in 0 : vector<1x256xf32>, vector<1x256xf32> -> vector<2x256xf32>
    %c0_8 = arith.constant 0 : index
    %c0_9 = arith.constant 0 : index
    %c0_10 = arith.constant 0 : index
    %c0_11 = arith.constant 0 : index
    %21 = vector.load %arg5[%c0_8, %c0_9, %c0_10, %c0_11] : memref<1x1x2x256xf32, #tpu.memory_space<vmem>>, vector<1x1x2x256xf32>
    %22 = vector.shape_cast %21 : vector<1x1x2x256xf32> to vector<2x256xf32>
    %23 = vector.shape_cast %20 : vector<2x256xf32> to vector<1x1x2x256xf32>
    tpu.vector_store %arg5[%c0_8, %c0_9, %c0_10, %c0_11], %23 {strides = array<i32>} : memref<1x1x2x256xf32, #tpu.memory_space<vmem>>, vector<1x1x2x256xf32>,
    return
  }
  func.func @transform_0(%arg0: i32, %arg1: i32) -> (i32, i32, i32) {
    %c0_i32 = arith.constant 0 : i32
    %c0_i32_0 = arith.constant 0 : i32
    %c0_i32_1 = arith.constant 0 : i32
    return %arg0, %c0_i32, %c0_i32_0 : i32, i32, i32
  }
  func.func @transform_1(%arg0: i32, %arg1: i32) -> (i32, i32) {
    %c0_i32 = arith.constant 0 : i32
    %c0_i32_0 = arith.constant 0 : i32
    %c0_i32_1 = arith.constant 0 : i32
    return %c0_i32, %c0_i32_0 : i32, i32
  }
  func.func @transform_2(%arg0: i32, %arg1: i32) -> (i32, i32, i32) {
    %c0_i32 = arith.constant 0 : i32
    %c0_i32_0 = arith.constant 0 : i32
    return %arg0, %arg1, %c0_i32 : i32, i32, i32
  }
  func.func @transform_3(%arg0: i32, %arg1: i32) -> (i32, i32, i32, i32) {
    %c0_i32 = arith.constant 0 : i32
    %c0_i32_0 = arith.constant 0 : i32
    %c0_i32_1 = arith.constant 0 : i32
    return %arg0, %arg1, %c0_i32, %c0_i32_0 : i32, i32, i32, i32
  }
}

module attributes {stable_mosaic.version = 11 : i64} {
  func.func @_bn_elu_conv_rows_kernel(%arg0: i32, %arg1: i32, %arg2: memref<1x34x256xbf16, #tpu.memory_space<vmem>>, %arg3: memref<1x256xf32, #tpu.memory_space<vmem>>, %arg4: memref<1x256xf32, #tpu.memory_space<vmem>>, %arg5: memref<768x256xbf16, #tpu.memory_space<vmem>>, %arg6: memref<1x16x256xbf16, #tpu.memory_space<vmem>>, %arg7: memref<1x1x2x256xf32, #tpu.memory_space<vmem>>) attributes {dimension_semantics = [#tpu.dimension_semantics<parallel>, #tpu.dimension_semantics<parallel>], iteration_bounds = array<i64: 2, 2>, scalar_prefetch = 0 : i64, scratch_operands = 0 : i64, tpu.core_type = #tpu.core_type<tc>, window_params = [{transform_indices = @transform_0, window_bounds = array<i64: 1, 34, 256>}, {pipeline_mode = #tpu.pipeline_mode<synchronous>, transform_indices = @transform_1, window_bounds = array<i64: 1, 256>}, {pipeline_mode = #tpu.pipeline_mode<synchronous>, transform_indices = @transform_2, window_bounds = array<i64: 1, 256>}, {pipeline_mode = #tpu.pipeline_mode<synchronous>, transform_indices = @transform_3, window_bounds = array<i64: 768, 256>}, {transform_indices = @transform_4, window_bounds = array<i64: 1, 16, 256>}, {transform_indices = @transform_5, window_bounds = array<i64: 1, 1, 2, 256>}]} {
    %c16_i32 = arith.constant 16 : i32
    %0 = arith.muli %arg1, %c16_i32 : i32
    %1 = tpu.assume_multiple %0, 8 : i32
    %c0 = arith.constant 0 : index
    %2 = arith.index_cast %1 : i32 to index
    %c0_0 = arith.constant 0 : index
    %3 = vector.load %arg2[%c0, %2, %c0_0] : memref<1x34x256xbf16, #tpu.memory_space<vmem>>, vector<1x18x256xbf16>
    %4 = vector.shape_cast %3 : vector<1x18x256xbf16> to vector<18x256xbf16>
    %5 = arith.extf %4 : vector<18x256xbf16> to vector<18x256xf32>
    %c0_1 = arith.constant 0 : index
    %c0_2 = arith.constant 0 : index
    %6 = vector.load %arg3[%c0_1, %c0_2] : memref<1x256xf32, #tpu.memory_space<vmem>>, vector<1x256xf32>
    %7 = vector.broadcast %6 : vector<1x256xf32> to vector<18x256xf32>
    %8 = arith.mulf %5, %7 : vector<18x256xf32>
    %c0_3 = arith.constant 0 : index
    %c0_4 = arith.constant 0 : index
    %9 = vector.load %arg4[%c0_3, %c0_4] : memref<1x256xf32, #tpu.memory_space<vmem>>, vector<1x256xf32>
    %10 = vector.broadcast %9 : vector<1x256xf32> to vector<18x256xf32>
    %11 = arith.addf %8, %10 : vector<18x256xf32>
    %cst = arith.constant 0.000000e+00 : f32
    %12 = vector.broadcast %cst : f32 to vector<18x256xf32>
    %13 = arith.cmpf ogt, %11, %12 : vector<18x256xf32>
    %cst_5 = arith.constant 0.000000e+00 : f32
    %14 = vector.broadcast %cst_5 : f32 to vector<18x256xf32>
    %15 = arith.minimumf %11, %14 : vector<18x256xf32>
    %16 = math.exp %15 : vector<18x256xf32>
    %cst_6 = arith.constant 1.000000e+00 : f32
    %17 = vector.broadcast %cst_6 : f32 to vector<18x256xf32>
    %18 = arith.subf %16, %17 : vector<18x256xf32>
    %19 = arith.select %13, %11, %18 : vector<18x256xi1>, vector<18x256xf32>
    %20 = tpu.iota {dimensions = array<i32: 0>} : vector<18x1xi32>
    %21 = vector.broadcast %1 : i32 to vector<18x1xi32>
    %22 = arith.addi %21, %20 : vector<18x1xi32>
    %c1_i32 = arith.constant 1 : i32
    %23 = vector.broadcast %c1_i32 : i32 to vector<18x1xi32>
    %24 = arith.cmpi sge, %22, %23 : vector<18x1xi32>
    %c32_i32 = arith.constant 32 : i32
    %25 = vector.broadcast %c32_i32 : i32 to vector<18x1xi32>
    %26 = arith.cmpi sle, %22, %25 : vector<18x1xi32>
    %27 = arith.andi %24, %26 : vector<18x1xi1>
    %cst_7 = arith.constant 0.000000e+00 : f32
    %28 = vector.shape_cast %27 : vector<18x1xi1> to vector<18x1xi1>
    %29 = vector.broadcast %28 : vector<18x1xi1> to vector<18x256xi1>
    %30 = vector.broadcast %cst_7 : f32 to vector<18x256xf32>
    %31 = arith.select %29, %19, %30 : vector<18x256xi1>, vector<18x256xf32>
    %32 = arith.truncf %31 : vector<18x256xf32> to vector<18x256xbf16>
    %33 = vector.extract_strided_slice %32 {offsets = [0, 0], sizes = [16, 256], strides = [1, 1]} : vector<18x256xbf16> to vector<16x256xbf16>
    %34 = vector.extract_strided_slice %32 {offsets = [1, 0], sizes = [16, 256], strides = [1, 1]} : vector<18x256xbf16> to vector<16x256xbf16>
    %35 = vector.extract_strided_slice %32 {offsets = [2, 0], sizes = [16, 256], strides = [1, 1]} : vector<18x256xbf16> to vector<16x256xbf16>
    %36 = tpu.concatenate %33, %34, %35 in 1 : vector<16x256xbf16>, vector<16x256xbf16>, vector<16x256xbf16> -> vector<16x768xbf16>
    %c0_8 = arith.constant 0 : index
    %c0_9 = arith.constant 0 : index
    %37 = vector.load %arg5[%c0_8, %c0_9] : memref<768x256xbf16, #tpu.memory_space<vmem>>, vector<768x256xbf16>
    %cst_10 = arith.constant dense<0.000000e+00> : vector<16x256xf32>
    %38 = tpu.matmul %36, %37, %cst_10 {dimension_numbers = #tpu.dot_dimension_numbers<[1], [0], [0], [1], [0, 0, 1, 1], [], []>} : vector<16x768xbf16>, vector<768x256xbf16>, vector<16x256xf32> -> vector<16x256xf32>
    %39 = arith.truncf %38 : vector<16x256xf32> to vector<16x256xbf16>
    %c0_11 = arith.constant 0 : index
    %c0_12 = arith.constant 0 : index
    %c0_13 = arith.constant 0 : index
    %40 = vector.load %arg6[%c0_11, %c0_12, %c0_13] : memref<1x16x256xbf16, #tpu.memory_space<vmem>>, vector<1x16x256xbf16>
    %41 = vector.shape_cast %40 : vector<1x16x256xbf16> to vector<16x256xbf16>
    %42 = vector.shape_cast %39 : vector<16x256xbf16> to vector<1x16x256xbf16>
    tpu.vector_store %arg6[%c0_11, %c0_12, %c0_13], %42 {strides = array<i32>} : memref<1x16x256xbf16, #tpu.memory_space<vmem>>, vector<1x16x256xbf16>,
    %cst_14 = arith.constant dense<0.000000e+00> : vector<256xf32>
    %43 = vector.multi_reduction <add>, %38, %cst_14 [0] : vector<16x256xf32> to vector<256xf32>
    %44 = vector.shape_cast %43 : vector<256xf32> to vector<1x256xf32>
    %45 = arith.mulf %38, %38 : vector<16x256xf32>
    %cst_15 = arith.constant dense<0.000000e+00> : vector<256xf32>
    %46 = vector.multi_reduction <add>, %45, %cst_15 [0] : vector<16x256xf32> to vector<256xf32>
    %47 = vector.shape_cast %46 : vector<256xf32> to vector<1x256xf32>
    %48 = tpu.concatenate %44, %47 in 0 : vector<1x256xf32>, vector<1x256xf32> -> vector<2x256xf32>
    %c0_16 = arith.constant 0 : index
    %c0_17 = arith.constant 0 : index
    %c0_18 = arith.constant 0 : index
    %c0_19 = arith.constant 0 : index
    %49 = vector.load %arg7[%c0_16, %c0_17, %c0_18, %c0_19] : memref<1x1x2x256xf32, #tpu.memory_space<vmem>>, vector<1x1x2x256xf32>
    %50 = vector.shape_cast %49 : vector<1x1x2x256xf32> to vector<2x256xf32>
    %51 = vector.shape_cast %48 : vector<2x256xf32> to vector<1x1x2x256xf32>
    tpu.vector_store %arg7[%c0_16, %c0_17, %c0_18, %c0_19], %51 {strides = array<i32>} : memref<1x1x2x256xf32, #tpu.memory_space<vmem>>, vector<1x1x2x256xf32>,
    return
  }
  func.func @transform_0(%arg0: i32, %arg1: i32) -> (i32, i32, i32) {
    %c0_i32 = arith.constant 0 : i32
    %c0_i32_0 = arith.constant 0 : i32
    %c0_i32_1 = arith.constant 0 : i32
    return %arg0, %c0_i32, %c0_i32_0 : i32, i32, i32
  }
  func.func @transform_1(%arg0: i32, %arg1: i32) -> (i32, i32) {
    %c0_i32 = arith.constant 0 : i32
    %c0_i32_0 = arith.constant 0 : i32
    %c0_i32_1 = arith.constant 0 : i32
    return %c0_i32, %c0_i32_0 : i32, i32
  }
  func.func @transform_2(%arg0: i32, %arg1: i32) -> (i32, i32) {
    %c0_i32 = arith.constant 0 : i32
    %c0_i32_0 = arith.constant 0 : i32
    %c0_i32_1 = arith.constant 0 : i32
    return %c0_i32, %c0_i32_0 : i32, i32
  }
  func.func @transform_3(%arg0: i32, %arg1: i32) -> (i32, i32) {
    %c0_i32 = arith.constant 0 : i32
    %c0_i32_0 = arith.constant 0 : i32
    %c0_i32_1 = arith.constant 0 : i32
    return %c0_i32, %c0_i32_0 : i32, i32
  }
  func.func @transform_4(%arg0: i32, %arg1: i32) -> (i32, i32, i32) {
    %c0_i32 = arith.constant 0 : i32
    %c0_i32_0 = arith.constant 0 : i32
    return %arg0, %arg1, %c0_i32 : i32, i32, i32
  }
  func.func @transform_5(%arg0: i32, %arg1: i32) -> (i32, i32, i32, i32) {
    %c0_i32 = arith.constant 0 : i32
    %c0_i32_0 = arith.constant 0 : i32
    %c0_i32_1 = arith.constant 0 : i32
    return %arg0, %arg1, %c0_i32, %c0_i32_0 : i32, i32, i32, i32
  }
}

module attributes {stable_mosaic.version = 11 : i64} {
  func.func @_bn_elu_kernel(%arg0: i32, %arg1: i32, %arg2: memref<1x16x256xbf16, #tpu.memory_space<vmem>>, %arg3: memref<1x256xf32, #tpu.memory_space<vmem>>, %arg4: memref<1x256xf32, #tpu.memory_space<vmem>>, %arg5: memref<1x16x256xf32, #tpu.memory_space<vmem>>) attributes {dimension_semantics = [#tpu.dimension_semantics<parallel>, #tpu.dimension_semantics<parallel>], iteration_bounds = array<i64: 2, 2>, scalar_prefetch = 0 : i64, scratch_operands = 0 : i64, tpu.core_type = #tpu.core_type<tc>, window_params = [{transform_indices = @transform_0, window_bounds = array<i64: 1, 16, 256>}, {pipeline_mode = #tpu.pipeline_mode<synchronous>, transform_indices = @transform_1, window_bounds = array<i64: 1, 256>}, {pipeline_mode = #tpu.pipeline_mode<synchronous>, transform_indices = @transform_2, window_bounds = array<i64: 1, 256>}, {transform_indices = @transform_3, window_bounds = array<i64: 1, 16, 256>}]} {
    %c0 = arith.constant 0 : index
    %c0_0 = arith.constant 0 : index
    %c0_1 = arith.constant 0 : index
    %0 = vector.load %arg2[%c0, %c0_0, %c0_1] : memref<1x16x256xbf16, #tpu.memory_space<vmem>>, vector<1x16x256xbf16>
    %1 = vector.shape_cast %0 : vector<1x16x256xbf16> to vector<16x256xbf16>
    %2 = arith.extf %1 : vector<16x256xbf16> to vector<16x256xf32>
    %c0_2 = arith.constant 0 : index
    %c0_3 = arith.constant 0 : index
    %3 = vector.load %arg3[%c0_2, %c0_3] : memref<1x256xf32, #tpu.memory_space<vmem>>, vector<1x256xf32>
    %4 = vector.broadcast %3 : vector<1x256xf32> to vector<16x256xf32>
    %5 = arith.mulf %2, %4 : vector<16x256xf32>
    %c0_4 = arith.constant 0 : index
    %c0_5 = arith.constant 0 : index
    %6 = vector.load %arg4[%c0_4, %c0_5] : memref<1x256xf32, #tpu.memory_space<vmem>>, vector<1x256xf32>
    %7 = vector.broadcast %6 : vector<1x256xf32> to vector<16x256xf32>
    %8 = arith.addf %5, %7 : vector<16x256xf32>
    %cst = arith.constant 0.000000e+00 : f32
    %9 = vector.broadcast %cst : f32 to vector<16x256xf32>
    %10 = arith.cmpf ogt, %8, %9 : vector<16x256xf32>
    %cst_6 = arith.constant 0.000000e+00 : f32
    %11 = vector.broadcast %cst_6 : f32 to vector<16x256xf32>
    %12 = arith.minimumf %8, %11 : vector<16x256xf32>
    %13 = math.exp %12 : vector<16x256xf32>
    %cst_7 = arith.constant 1.000000e+00 : f32
    %14 = vector.broadcast %cst_7 : f32 to vector<16x256xf32>
    %15 = arith.subf %13, %14 : vector<16x256xf32>
    %16 = arith.select %10, %8, %15 : vector<16x256xi1>, vector<16x256xf32>
    %c0_8 = arith.constant 0 : index
    %c0_9 = arith.constant 0 : index
    %c0_10 = arith.constant 0 : index
    %17 = vector.load %arg5[%c0_8, %c0_9, %c0_10] : memref<1x16x256xf32, #tpu.memory_space<vmem>>, vector<1x16x256xf32>
    %18 = vector.shape_cast %17 : vector<1x16x256xf32> to vector<16x256xf32>
    %19 = vector.shape_cast %16 : vector<16x256xf32> to vector<1x16x256xf32>
    tpu.vector_store %arg5[%c0_8, %c0_9, %c0_10], %19 {strides = array<i32>} : memref<1x16x256xf32, #tpu.memory_space<vmem>>, vector<1x16x256xf32>,
    return
  }
  func.func @transform_0(%arg0: i32, %arg1: i32) -> (i32, i32, i32) {
    %c0_i32 = arith.constant 0 : i32
    %c0_i32_0 = arith.constant 0 : i32
    return %arg0, %arg1, %c0_i32 : i32, i32, i32
  }
  func.func @transform_1(%arg0: i32, %arg1: i32) -> (i32, i32) {
    %c0_i32 = arith.constant 0 : i32
    %c0_i32_0 = arith.constant 0 : i32
    %c0_i32_1 = arith.constant 0 : i32
    return %c0_i32, %c0_i32_0 : i32, i32
  }
  func.func @transform_2(%arg0: i32, %arg1: i32) -> (i32, i32) {
    %c0_i32 = arith.constant 0 : i32
    %c0_i32_0 = arith.constant 0 : i32
    %c0_i32_1 = arith.constant 0 : i32
    return %c0_i32, %c0_i32_0 : i32, i32
  }
  func.func @transform_3(%arg0: i32, %arg1: i32) -> (i32, i32, i32) {
    %c0_i32 = arith.constant 0 : i32
    %c0_i32_0 = arith.constant 0 : i32
    return %arg0, %arg1, %c0_i32 : i32, i32, i32
  }
}

</mosaic_0001>

<bundles_post_ra>
// kernel: tile.23
= control target key start
LH: loop header
LB: loop body
LE: loop exit
PB: predicated region body
PF: predicated region fallthrough
CT: control target
= control target key end

     0   :  { %s40_s0 = inlined_call_operand.vmem [shape: f32[8], index: 0, kind: input, shape index: {}]   ;;  %s41_s1 = inlined_call_operand.vmem [shape: f32[32,8], index: 1, kind: output, shape index: {}]  }
   0x1   :  { %v4_v0 = vld [vmem:[%s40_s0] ss:$0 sm:$0xff] }
   0x2   :  { %5 = vst [vmem:[%s41_s1] sm:$0xff] %v4_v0  ;;  %12 = vst [vmem:[%s41_s1 + $0x8] sm:$0xff] %v4_v0 }
   0x3   :  { %13 = vst [vmem:[%s41_s1 + $0x10] sm:$0xff] %v4_v0  ;;  %14 = vst [vmem:[%s41_s1 + $0x18] sm:$0xff] %v4_v0 }

// kernel: tile.24
= control target key start
LH: loop header
LB: loop body
LE: loop exit
PB: predicated region body
PF: predicated region fallthrough
CT: control target
= control target key end

     0   :  { %s7_s6 = smov 3  ;;  %s21_s9 = smov 3  ;;  %vm4_vm0 = vcmask 64512   ;;  %vm11_vm1 = vcmask 1048512   ;;  %vm18_vm2 = vcmask 982912   ;;  %vm25_vm3 = vcmask 917312   ;;  %s235_s0 = inlined_call_operand.vmem [shape: f32[32,8], index: 0, kind: input, shape index: {}]   ;;  %s236_s1 = inlined_call_operand.vmem [shape: f32[1,256], index: 1, kind: output, shape index: {}]  }
   0x1   :  { %v125_v0 = vld [vmem:[%s235_s0 + $0xf] ss:$16 sm:%s7_s6]   ;;  %s156_s10 = smov 120   ;;  %v127_v1 = vld [vmem:[%s235_s0 + $0xd] ss:$16 sm:%s21_s9]   ;;  %s14_s13 = smov 3 }
   0x2   :  { %9 = vrot.lane.b32.xlu0 %v125_v0, %s156_s10  ;;  %s157_s14 = smov 104   ;;  %v126_v2 = vld [vmem:[%s235_s0 + $0xe] ss:$16 sm:%s14_s13]   ;;  %s28_s17 = smov 3  ;;  %vm32_vm4 = vcmask 851712   ;;  %vm39_vm5 = vcmask 786112  }
   0x3   :  { %23 = vrot.lane.b32.xlu1 %v127_v1, %s157_s14  ;;  %v128_v3 = vld [vmem:[%s235_s0 + $0xc] ss:$16 sm:%s28_s17]   ;;  %s35_s20 = smov 3  ;;  %s42_s21 = smov 3  ;;  %vm46_vm6 = vcmask 720512   ;;  %vm53_vm7 = vcmask 654912  }
   0x4   :  { %s158_s22 = smov 112   ;;  %s159_s23 = smov 96   ;;  %v129_v4 = vld [vmem:[%s235_s0 + $0xb] ss:$16 sm:%s35_s20]   ;;  %v130_v5 = vld [vmem:[%s235_s0 + $0xa] ss:$16 sm:%s42_s21]  }
   0x5   :  { %s49_s28 = smov 3  ;;  %s56_s29 = smov 3  ;;  %vm60_vm8 = vcmask 589312   ;;  %vm67_vm9 = vcmask 523712   ;;  %vm74_vm10 = vcmask 458112   ;;  %vm81_vm11 = vcmask 392512  }
   0x6   :  { %16 = vrot.lane.b32.xlu0 %v126_v2, %s158_s22  ;;  %s160_s30 = smov 88   ;;  %s161_s2 = smov 80   ;;  %v131_v6 = vld [vmem:[%s235_s0 + $0x9] ss:$16 sm:%s49_s28]   ;;  %vm88_vm12 = vcmask 326912   ;;  %vm95_vm13 = vcmask 261312  }
   0x7   :  { %30 = vrot.lane.b32.xlu1 %v128_v3, %s159_s23  ;;  %v132_v7 = vld [vmem:[%s235_s0 + $0x8] ss:$16 sm:%s56_s29]   ;;  %s63_s7 = smov 3  ;;  %s70_s8 = smov 3  ;;  %vm102_vm14 = vcmask 195712   ;;  %vm109_vm15 = vcmask 130112  }
   0x8   :  { %s162_s9 = smov 72   ;;  %s163_s10 = smov 64   ;;  %v133_v8 = vld [vmem:[%s235_s0 + $0x7] ss:$16 sm:%s63_s7]   ;;  %v134_v9 = vld [vmem:[%s235_s0 + $0x6] ss:$16 sm:%s70_s8]  }
   0x9   :  { %s2_s13 = smov 3  ;;  %s77_s16 = smov 3 }
   0xa   :  { %37 = vrot.lane.b32.xlu0 %v129_v4, %s160_s30  ;;  %v3_v10 = vld [vmem:[%s235_s0] ss:$16 sm:%s2_s13]   ;;  %s84_s19 = smov 3  ;;  %s164_s20 = smov 56  }
   0xb   :  { %44 = vrot.lane.b32.xlu1 %v130_v5, %s161_s2  ;;  %5 = vst.msk [vmem:[#allocation0] ss:$8 sm:$0x3] %vm4_vm0, %v3_v10   ;;  %s165_s21 = smov 48   ;;  %v135_v11 = vld [vmem:[%s235_s0 + $0x5] ss:$16 sm:%s77_s16]  }
   0xc   :  { %v136_v12 = vld [vmem:[%s235_s0 + $0x4] ss:$16 sm:%s84_s19]   ;;  %s91_s26 = smov 3  ;;  %s98_s27 = smov 3 }
   0xd   :  { %s166_s28 = smov 40   ;;  %s167_s29 = smov 32   ;;  %v137_v13 = vld [vmem:[%s235_s0 + $0x3] ss:$16 sm:%s91_s26]   ;;  %v138_v14 = vld [vmem:[%s235_s0 + $0x2] ss:$16 sm:%s98_s27]  }
   0xe   :  { %51 = vrot.lane.b32.xlu0 %v131_v6, %s162_s9  ;;  %s105_s5 = smov 3  ;;  %s168_s6 = smov 24  }
   0xf   :  { %58 = vrot.lane.b32.xlu1 %v132_v7, %s163_s10  ;;  %s169_s7 = smov 16   ;;  %v139_v15 = vld [vmem:[%s235_s0 + $0x1] ss:$16 sm:%s105_s5]   ;;  %s170_s0 = smov 8  }
  0x12   :  { %65 = vrot.lane.b32.xlu0 %v133_v8, %s164_s20 }
  0x13   :  { %72 = vrot.lane.b32.xlu1 %v134_v9, %s165_s21 }
  0x16   :  { %79 = vrot.lane.b32.xlu0 %v135_v11, %s166_s28 }
  0x17   :  { %86 = vrot.lane.b32.xlu1 %v136_v12, %s167_s29 }
  0x1a   :  { %93 = vrot.lane.b32.xlu0 %v137_v13, %s168_s6 }
  0x1b   :  { %100 = vrot.lane.b32.xlu1 %v138_v14, %s169_s7 }
  0x1e   :  { %107 = vrot.lane.b32.xlu0 %v139_v15, %s170_s0 }
  0x74   :  { %v10_v16 = vpop.permute.xlu0 %9  }
  0x75   :  { %12 = vst.msk [vmem:[#allocation0] ss:$8 sm:$0x3] %vm11_vm1, %v10_v16   ;;  %v24_v17 = vpop.permute.xlu1 %23  }
  0x78   :  { %v17_v18 = vpop.permute.xlu0 %16  }
  0x79   :  { %19 = vst.msk [vmem:[#allocation0] ss:$8 sm:$0x3] %vm18_vm2, %v17_v18   ;;  %v31_v19 = vpop.permute.xlu1 %30  }
  0x7a   :  { %26 = vst.msk [vmem:[#allocation0] ss:$8 sm:$0x3] %vm25_vm3, %v24_v17  }
  0x7b   :  { %33 = vst.msk [vmem:[#allocation0] ss:$8 sm:$0x3] %vm32_vm4, %v31_v19  }
  0x7c   :  { %v38_v20 = vpop.permute.xlu0 %37  }
  0x7d   :  { %40 = vst.msk [vmem:[#allocation0] ss:$8 sm:$0x3] %vm39_vm5, %v38_v20   ;;  %v45_v21 = vpop.permute.xlu1 %44  }
  0x7e   :  { %47 = vst.msk [vmem:[#allocation0] ss:$8 sm:$0x3] %vm46_vm6, %v45_v21  }
  0x80   :  { %v52_v22 = vpop.permute.xlu0 %51  }
  0x81   :  { %54 = vst.msk [vmem:[#allocation0] ss:$8 sm:$0x3] %vm53_vm7, %v52_v22   ;;  %v59_v23 = vpop.permute.xlu1 %58  }
  0x82   :  { %61 = vst.msk [vmem:[#allocation0] ss:$8 sm:$0x3] %vm60_vm8, %v59_v23  }
  0x84   :  { %v66_v24 = vpop.permute.xlu0 %65  }
  0x85   :  { %68 = vst.msk [vmem:[#allocation0] ss:$8 sm:$0x3] %vm67_vm9, %v66_v24   ;;  %v73_v25 = vpop.permute.xlu1 %72  }
  0x86   :  { %75 = vst.msk [vmem:[#allocation0] ss:$8 sm:$0x3] %vm74_vm10, %v73_v25  }
  0x88   :  { %v80_v26 = vpop.permute.xlu0 %79  }
  0x89   :  { %82 = vst.msk [vmem:[#allocation0] ss:$8 sm:$0x3] %vm81_vm11, %v80_v26   ;;  %v87_v27 = vpop.permute.xlu1 %86  }
  0x8a   :  { %89 = vst.msk [vmem:[#allocation0] ss:$8 sm:$0x3] %vm88_vm12, %v87_v27  }
  0x8c   :  { %v94_v28 = vpop.permute.xlu0 %93  }
  0x8d   :  { %96 = vst.msk [vmem:[#allocation0] ss:$8 sm:$0x3] %vm95_vm13, %v94_v28   ;;  %v101_v29 = vpop.permute.xlu1 %100  }
  0x8e   :  { %103 = vst.msk [vmem:[#allocation0] ss:$8 sm:$0x3] %vm102_vm14, %v101_v29  }
  0x90   :  { %v108_v30 = vpop.permute.xlu0 %107  }
  0x91   :  { %110 = vst.msk [vmem:[#allocation0] ss:$8 sm:$0x3] %vm109_vm15, %v108_v30  }
  0x98   :  { %v115_v31 = vld [vmem:[#allocation0] sm:$0x1]  ;;  %v120_v32 = vld [vmem:[#allocation0 + $0x8] sm:$0x1] }
  0x99   :  { %118 = vst [vmem:[%s236_s1] sm:$0x1] %v115_v31  ;;  %140 = vst [vmem:[%s236_s1 + $0x1] sm:$0x1] %v120_v32 }

// kernel: up_forward.3
= control target key start
LH: loop header
LB: loop body
LE: loop exit
PB: predicated region body
PF: predicated region fallthrough
CT: control target
= control target key end

     0   :  { %s1564_s12 = smov 0   ;;  %s1566_s13 = smov 0   ;;  %s1938_s0 = inlined_call_operand.vmem [shape: bf16[2,34,256], index: 0, kind: input, shape index: {}]   ;;  %s1939_s1 = inlined_call_operand.vmem [shape: bf16[768,256], index: 1, kind: input, shape index: {}]   ;;  %s1940_s2 = inlined_call_operand.vmem [shape: bf16[2,32,256], index: 2, kind: output, shape index: {0}]   ;;  %s1941_s3 = inlined_call_operand.vmem [shape: f32[2,2,2,256], index: 3, kind: output, shape index: {1}]  }
   0x1   :  { %s1568_s14 = smov 0   ;;  %s1570_s15 = smov 0  }
   0x2   :  { %s1572_s16 = smov 0  }
   0x3 LB: > { %s23_s17 = sadd.s32 1, %s1534_s14  ;;  %s26_s18 = sadd.s32 1, %s1538_s15  ;;  %s1542_s16 = sphi %s1572_s16, %s14_s16   ;;  %s1538_s15 = sphi %s1570_s15, %s1945_s15   ;;  %s1534_s14 = sphi %s1568_s14, %s1944_s14   ;;  %s1530_s13 = sphi %s1566_s13, %s1943_s13   ;;  %s1526_s12 = sphi %s1564_s12, %s1942_s12  }
   0x4   : > { %p24_p0 = scmp.ge.s32.totalorder %s23_s17, 2  ;;  %p1194_p1 = scmp.ge.s32.totalorder %s1542_s16, 1 }
   0x5   : > { %p156_p2 = scmp.lt.s32.totalorder %s1542_s16, 5 }
   0x6   : > { %s1947_s17 = smov (%p24_p0, %s23_s17), 0  ;;  %s1949_s18 = smov (!%p24_p0, %s26_s18), %s1538_s15 }
   0x7   : > { %p157_p3 = pnand %p1194_p1, %p156_p2  ;;  %p28_p4 = scmp.ge.s32.totalorder %s1949_s18, 2 }
   0x8   : > { %p194_p5 = scmp.lt.s32.totalorder (!%p157_p3), %s1530_s13, 1  ;;  %s1203_s27 = sshll.u32 (!%p157_p3), %s1526_s12, 4 }
   0x9   : > { %s1951_s18 = smov (%p28_p4, %s1949_s18), 0  ;;  %160 = sbr.rel (%p157_p3) target bundleno = 365 (0x16d), region = 28 }
   0xa   : > { %p212_p7 = scmp.lt.s32.totalorder (!%p157_p3), %s1526_s12, 1 }
   0xe   : > { %v1355_v0 = vld [vmem:[%s1939_s1 + $0x74] ss:$8 sps:$4 sm:$0xff]   ;;  %v1359_v2 = vld [vmem:[%s1939_s1 + $0x70] ss:$8 sps:$4 sm:$0xff]   ;;  %v1361_v4 = vld [vmem:[%s1939_s1 + $0x64] ss:$8 sps:$4 sm:$0xff]  }
   0xf   : > { %v1357_v1 = vld [vmem:[%s1939_s1 + $0x174] ss:$8 sps:$4 sm:$0xff]   ;;  %855 = vmatprep.subr.bf16.mxu0 %v1355_v0  ;;  %v1360_v3 = vld [vmem:[%s1939_s1 + $0x170] ss:$8 sps:$4 sm:$0xff]   ;;  %v1363_v5 = vld [vmem:[%s1939_s1 + $0x164] ss:$8 sps:$4 sm:$0xff]  }
  0x10   : > { %898 = vmatprep.subr.bf16.mxu1 %v1357_v1  ;;  %856 = vmatpush1.bf16.msra.mxu0 %v1359_v2  ;;  %v1365_v6 = vld [vmem:[%s1939_s1 + $0x60] ss:$8 sps:$4 sm:$0xff]   ;;  %v1367_v8 = vld [vmem:[%s1939_s1 + $0x54] ss:$8 sps:$4 sm:$0xff]   ;;  %v1371_v10 = vld [vmem:[%s1939_s1 + $0x50] ss:$8 sps:$4 sm:$0xff]  }
  0x11   : > { %899 = vmatpush1.bf16.msra.mxu1 %v1360_v3  ;;  %857 = vmatprep.subr.bf16.mxu0 %v1361_v4  ;;  %v1366_v7 = vld [vmem:[%s1939_s1 + $0x160] ss:$8 sps:$4 sm:$0xff]   ;;  %v1369_v9 = vld [vmem:[%s1939_s1 + $0x154] ss:$8 sps:$4 sm:$0xff]   ;;  %v1372_v11 = vld [vmem:[%s1939_s1 + $0x150] ss:$8 sps:$4 sm:$0xff]  }
  0x12   : > { %900 = vmatprep.subr.bf16.mxu1 %v1363_v5  ;;  %v1373_v12 = vld [vmem:[%s1939_s1 + $0x44] ss:$8 sps:$4 sm:$0xff]   ;;  %v1377_v14 = vld [vmem:[%s1939_s1 + $0x40] ss:$8 sps:$4 sm:$0xff]   ;;  %v1379_v16 = vld [vmem:[%s1939_s1 + $0x34] ss:$8 sps:$4 sm:$0xff]  }
  0x13   : > { %v1375_v13 = vld [vmem:[%s1939_s1 + $0x144] ss:$8 sps:$4 sm:$0xff]   ;;  %v1378_v15 = vld [vmem:[%s1939_s1 + $0x140] ss:$8 sps:$4 sm:$0xff]   ;;  %v1381_v17 = vld [vmem:[%s1939_s1 + $0x134] ss:$8 sps:$4 sm:$0xff]  }
  0x14   : > { %858 = vmatpush1.bf16.msra.mxu0 %v1365_v6  ;;  %v1383_v18 = vld [vmem:[%s1939_s1 + $0x30] ss:$8 sps:$4 sm:$0xff]   ;;  %v1385_v20 = vld [vmem:[%s1939_s1 + $0x24] ss:$8 sps:$4 sm:$0xff]   ;;  %v1389_v22 = vld [vmem:[%s1939_s1 + $0x20] ss:$8 sps:$4 sm:$0xff]  }
  0x15   : > { %901 = vmatpush1.bf16.msra.mxu1 %v1366_v7  ;;  %859 = vmatprep.subr.bf16.mxu0 %v1367_v8  ;;  %v1384_v19 = vld [vmem:[%s1939_s1 + $0x130] ss:$8 sps:$4 sm:$0xff]   ;;  %v1387_v21 = vld [vmem:[%s1939_s1 + $0x124] ss:$8 sps:$4 sm:$0xff]   ;;  %v1390_v23 = vld [vmem:[%s1939_s1 + $0x120] ss:$8 sps:$4 sm:$0xff]  }
  0x16   : > { %902 = vmatprep.subr.bf16.mxu1 %v1369_v9  ;;  %v1391_v24 = vld [vmem:[%s1939_s1 + $0x14] ss:$8 sps:$4 sm:$0xff]   ;;  %v1395_v26 = vld [vmem:[%s1939_s1 + $0x10] ss:$8 sps:$4 sm:$0xff]   ;;  %v1397_v28 = vld [vmem:[%s1939_s1 + $0x4] ss:$8 sps:$4 sm:$0xff]  }
  0x17   : > { %v1393_v25 = vld [vmem:[%s1939_s1 + $0x114] ss:$8 sps:$4 sm:$0xff]   ;;  %v1396_v27 = vld [vmem:[%s1939_s1 + $0x110] ss:$8 sps:$4 sm:$0xff]   ;;  %v1399_v29 = vld [vmem:[%s1939_s1 + $0x104] ss:$8 sps:$4 sm:$0xff]  }
  0x18   : > { %860 = vmatpush1.bf16.msra.mxu0 %v1371_v10  ;;  %v1401_v30 = vld [vmem:[%s1939_s1] ss:$8 sps:$4 sm:$0xff]   ;;  %v1403_v32 = vld [vmem:[%s1939_s1 + $0xf4] ss:$8 sps:$4 sm:$0xff]   ;;  %s1953_s13 = smov (!%p194_p5, %s1530_s13), 1  ;;  %vm270_vm1 = vcmask 1046528  }
  0x19   : > { %903 = vmatpush1.bf16.msra.mxu1 %v1372_v11  ;;  %861 = vmatprep.subr.bf16.mxu0 %v1373_v12  ;;  %v1402_v31 = vld [vmem:[%s1939_s1 + $0x100] ss:$8 sps:$4 sm:$0xff]   ;;  %v1405_v33 = vld [vmem:[%s1939_s1 + $0x1f4] ss:$8 sps:$4 sm:$0xff]   ;;  %v1407_v34 = vld [vmem:[%s1939_s1 + $0xf0] ss:$8 sps:$4 sm:$0xff]  }
  0x1a   : > { %904 = vmatprep.subr.bf16.mxu1 %v1375_v13  ;;  %v1408_v35 = vld [vmem:[%s1939_s1 + $0x1f0] ss:$8 sps:$4 sm:$0xff]   ;;  %v1409_v36 = vld [vmem:[%s1939_s1 + $0xe4] ss:$8 sps:$4 sm:$0xff]   ;;  %s1314_s8 = smul.u32 40, %s1953_s13  ;;  %s1198_s19 = sshll.u32 %s1953_s13, 3 }
  0x1b   : > { %v1411_v37 = vld [vmem:[%s1939_s1 + $0x1e4] ss:$8 sps:$4 sm:$0xff]   ;;  %v1413_v38 = vld [vmem:[%s1939_s1 + $0xe0] ss:$8 sps:$4 sm:$0xff]   ;;  %v1415_v40 = vld [vmem:[%s1939_s1 + $0xd4] ss:$8 sps:$4 sm:$0xff]  }
  0x1c   : > { %862 = vmatpush1.bf16.msra.mxu0 %v1377_v14  ;;  %v1414_v39 = vld [vmem:[%s1939_s1 + $0x1e0] ss:$8 sps:$4 sm:$0xff]   ;;  %v1417_v41 = vld [vmem:[%s1939_s1 + $0x1d4] ss:$8 sps:$4 sm:$0xff]   ;;  %s198_s26 = scalar_lea.vmem %s1938_s0, %s1314_s8  ;;  %v1419_v42 = vld [vmem:[%s1939_s1 + $0xd0] ss:$8 sps:$4 sm:$0xff]  }
  0x1d   : > { %905 = vmatpush1.bf16.msra.mxu1 %v1378_v15  ;;  %863 = vmatprep.subr.bf16.mxu0 %v1379_v16  ;;  %v1420_v43 = vld [vmem:[%s1939_s1 + $0x1d0] ss:$8 sps:$4 sm:$0xff]   ;;  %v1421_v44 = vld [vmem:[%s1939_s1 + $0xc4] ss:$8 sps:$4 sm:$0xff]   ;;  %s224_s7 = scalar_lea.vmem %s198_s26, %s1203_s27  ;;  %v1425_v46 = vld [vmem:[%s1939_s1 + $0xc0] ss:$8 sps:$4 sm:$0xff]  }
  0x1e   : > { %906 = vmatprep.subr.bf16.mxu1 %v1381_v17  ;;  %v1423_v45 = vld [vmem:[%s1939_s1 + $0x1c4] ss:$8 sps:$4 sm:$0xff]   ;;  %v227_v48 = vld [vmem:[%s224_s7 + $0x10] sm:$0x11]  ;;  %v1426_v49 = vld [vmem:[%s1939_s1 + $0x1c0] ss:$8 sps:$4 sm:$0xff]  }
  0x1f   : > { %v1748_v47 = vld [vmem:[%s224_s7 + $0x4] ss:$8 sps:$4 sm:$0xff]   ;;  %v1753_v50 = vcombine.high %v227_v48, %v227_v48  ;;  %v1427_v51 = vld [vmem:[%s1939_s1 + $0xb4] ss:$8 sps:$4 sm:$0xff]   ;;  %vm243_vm0 = vsmask.f32 7424  ;;  %v1208_v0 = vcombine.low %v227_v48, %v227_v48 }
  0x20   : > { %864 = vmatpush1.bf16.msra.mxu0 %v1383_v18  ;;  %v1429_v52 = vld [vmem:[%s1939_s1 + $0x1b4] ss:$8 sps:$4 sm:$0xff]   ;;  %v257_v53 = vshrl.u32 %v1748_v47, 16  ;;  %v259_v54 = vshll.u32 %v1748_v47, 16  ;;  %887 = vmatprep.mubr.bf16.mxu0 %v1748_v47  ;;  %v1431_v56 = vld [vmem:[%s1939_s1 + $0xb0] ss:$8 sps:$4 sm:$0xff]  }
  0x21   : > { %907 = vmatpush1.bf16.msra.mxu1 %v1384_v19  ;;  %865 = vmatprep.subr.bf16.mxu0 %v1385_v20  ;;  %v264_v55 = vshll.u32 %v1753_v50, 16  ;;  %v1432_v57 = vld [vmem:[%s1939_s1 + $0x1b0] ss:$8 sps:$4 sm:$0xff]   ;;  %v1433_v59 = vld [vmem:[%s1939_s1 + $0xa4] ss:$8 sps:$4 sm:$0xff]   ;;  %v272_v5 = vrot.slane %v1208_v0, 1 }
  0x22   : > { %908 = vmatprep.subr.bf16.mxu1 %v1387_v21  ;;  %v261_v58 = vrot.slane %v259_v54, 1  ;;  %v1454_v61 = vld [vmem:[%s224_s7] ss:$8 sps:$4 sm:$0xff]   ;;  %v1435_v62 = vld [vmem:[%s1939_s1 + $0x1a4] ss:$8 sps:$4 sm:$0xff]   ;;  %v252_v15 = vshll.u32 %v1208_v0, 16 }
  0x23   : > { %v266_v60 = vrot.slane %v264_v55, 1  ;;  %v271_v1 = vrot.slane %v1454_v61, 1  ;;  %v1437_v2 = vld [vmem:[%s1939_s1 + $0xa0] ss:$8 sps:$4 sm:$0xff]   ;;  %v1439_v6 = vld [vmem:[%s1939_s1 + $0x94] ss:$8 sps:$4 sm:$0xff]  }
  0x24   : > { %866 = vmatpush1.bf16.msra.mxu0 %v1389_v22  ;;  %v262_v63 = vor.u32 %v261_v58, %v257_v53  ;;  %v1438_v3 = vld [vmem:[%s1939_s1 + $0x1a0] ss:$8 sps:$4 sm:$0xff]   ;;  %v247_v7 = vshll.u32 %v1454_v61, 16  ;;  %v1441_v8 = vld [vmem:[%s1939_s1 + $0x194] ss:$8 sps:$4 sm:$0xff]   ;;  %v245_v13 = vshrl.u32 %v1454_v61, 16 }
  0x25   : > { %909 = vmatpush1.bf16.msra.mxu1 %v1390_v23  ;;  %867 = vmatprep.subr.bf16.mxu0 %v1391_v24  ;;  %v1791_v9 = vsel %vm270_vm1, %v271_v1, %v272_v5  ;;  %v1443_v10 = vld [vmem:[%s1939_s1 + $0x90] ss:$8 sps:$4 sm:$0xff]   ;;  %v1445_v12 = vld [vmem:[%s1939_s1 + $0x84] ss:$8 sps:$4 sm:$0xff]   ;;  %v1449_v17 = vld [vmem:[%s1939_s1 + $0x80] ss:$8 sps:$4 sm:$0xff]  }
  0x26   : > { %910 = vmatprep.subr.bf16.mxu1 %v1393_v25  ;;  %v267_v4 = vsel %vm243_vm0, %v262_v63, %v266_v60  ;;  %v1444_v11 = vld [vmem:[%s1939_s1 + $0x190] ss:$8 sps:$4 sm:$0xff]   ;;  %v249_v14 = vrot.slane %v247_v7, 1  ;;  %v1447_v16 = vld [vmem:[%s1939_s1 + $0x184] ss:$8 sps:$4 sm:$0xff]   ;;  %v254_v20 = vrot.slane %v252_v15, 1 }
  0x27   : > { %930 = vmatprep.mubr.bf16.mxu1 %v267_v4  ;;  %v1450_v18 = vld [vmem:[%s1939_s1 + $0x180] ss:$8 sps:$4 sm:$0xff]   ;;  %v1458_v21 = vld [vmem:[%s1939_s1 + $0x274] ss:$8 sps:$4 sm:$0xff]   ;;  %v274_v22 = vrot.slane %v1748_v47, 1  ;;  %v275_v23 = vrot.slane %v1753_v50, 1 }
  0x28   : > { %868 = vmatpush1.bf16.msra.mxu0 %v1395_v26  ;;  %v250_v19 = vor.u32 %v249_v14, %v245_v13  ;;  %v1456_v25 = vld [vmem:[%s1939_s1 + $0x270] ss:$8 sps:$4 sm:$0xff]   ;;  %v1461_v26 = vld [vmem:[%s1939_s1 + $0x264] ss:$8 sps:$4 sm:$0xff]   ;;  %v1489_v48 = vld [vmem:[%s1939_s1 + $0x2c0] ss:$8 sps:$4 sm:$0xff]  }
  0x29   : > { %911 = vmatpush1.bf16.msra.mxu1 %v1396_v27  ;;  %869 = vmatprep.subr.bf16.mxu0 %v1397_v28  ;;  %v276_v27 = vsel %vm270_vm1, %v274_v22, %v275_v23  ;;  %v1459_v28 = vld [vmem:[%s1939_s1 + $0x260] ss:$8 sps:$4 sm:$0xff]   ;;  %v1491_v47 = vld [vmem:[%s1939_s1 + $0x2c4] ss:$8 sps:$4 sm:$0xff]   ;;  %v1492_v50 = vld [vmem:[%s1939_s1 + $0x2b0] ss:$8 sps:$4 sm:$0xff]  }
  0x2a   : > { %912 = vmatprep.subr.bf16.mxu1 %v1399_v29  ;;  %v255_v24 = vsel %vm243_vm0, %v250_v19, %v254_v20  ;;  %v1464_v29 = vld [vmem:[%s1939_s1 + $0x254] ss:$8 sps:$4 sm:$0xff]   ;;  %v1498_v54 = vld [vmem:[%s1939_s1 + $0x290] ss:$8 sps:$4 sm:$0xff]   ;;  %v1503_v55 = vld [vmem:[%s1939_s1 + $0x284] ss:$8 sps:$4 sm:$0xff]  }
  0x2b   : > { %v1500_v53 = vld [vmem:[%s1939_s1 + $0x294] ss:$8 sps:$4 sm:$0xff]   ;;  %s1196_s7 = sshll.u32 %s1526_s12, 1  ;;  %s1957_s12 = smov (!%p212_p7, %s1526_s12), 1  ;;  %vm1030_vm2 = vcmask 1040384  }
  0x2c   : > { %870 = vmatpush1.bf16.msra.mxu0 %v1401_v30  ;;  %v1462_v30 = vld [vmem:[%s1939_s1 + $0x250] ss:$8 sps:$4 sm:$0xff]   ;;  %p202_p6 = scmp.lt.s32.totalorder %s1196_s7, 3  ;;  %s1200_s25 = sshll.u32 %s1957_s12, 1 }
  0x2d   : > { %913 = vmatpush1.bf16.msra.mxu1 %v1402_v31  ;;  %871 = vmatprep.subr.bf16.mxu0 %v1403_v32  ;;  %v1467_v31 = vld [vmem:[%s1939_s1 + $0x244] ss:$8 sps:$4 sm:$0xff]   ;;  %v1465_v32 = vld [vmem:[%s1939_s1 + $0x240] ss:$8 sps:$4 sm:$0xff]   ;;  %s1201_s26 = sshll.u32 %s1953_s13, 2 }
  0x2e   : > { %914 = vmatprep.subr.bf16.mxu1 %v1405_v33  ;;  %v1470_v33 = vld [vmem:[%s1939_s1 + $0x234] ss:$8 sps:$4 sm:$0xff]   ;;  %s1955_s7 = smov (!%p202_p6, %s1196_s7), 3  ;;  %s216_s27 = sadd.s32 %s1201_s26, %s1200_s25 }
  0x2f   : > { %s1197_s11 = sshll.u32 %s1955_s7, 1  ;;  %s1202_s28 = sshll.u32 %s216_s27, 1 }
  0x30   : > { %872 = vmatpush2.bf16.msra.mxu0 %v1407_v34  ;;  %v1468_v34 = vld [vmem:[%s1939_s1 + $0x230] ss:$8 sps:$4 sm:$0xff]   ;;  %s206_s20 = sadd.s32 %s1198_s19, %s1197_s11  ;;  %s218_s12 = scalar_lea.vmem %s1941_s3, %s1202_s28 }
  0x31   : > { %915 = vmatpush2.bf16.msra.mxu1 %v1408_v35  ;;  %873 = vmatprep.subr.bf16.mxu0 %v1409_v36  ;;  %v1473_v35 = vld [vmem:[%s1939_s1 + $0x224] ss:$8 sps:$4 sm:$0xff]   ;;  %v1471_v36 = vld [vmem:[%s1939_s1 + $0x220] ss:$8 sps:$4 sm:$0xff]   ;;  %s1199_s21 = sshll.u32 %s206_s20, 2 }
  0x32   : > { %916 = vmatprep.subr.bf16.mxu1 %v1411_v37  ;;  %v1476_v37 = vld [vmem:[%s1939_s1 + $0x214] ss:$8 sps:$4 sm:$0xff]   ;;  %s208_s24 = scalar_lea.vmem %s1940_s2, %s1199_s21 }
  0x34   : > { %874 = vmatpush2.bf16.msra.mxu0 %v1413_v38  ;;  %v1474_v38 = vld [vmem:[%s1939_s1 + $0x210] ss:$8 sps:$4 sm:$0xff]  }
  0x35   : > { %917 = vmatpush2.bf16.msra.mxu1 %v1414_v39  ;;  %875 = vmatprep.subr.bf16.mxu0 %v1415_v40  ;;  %v1479_v39 = vld [vmem:[%s1939_s1 + $0x204] ss:$8 sps:$4 sm:$0xff]   ;;  %v1477_v40 = vld [vmem:[%s1939_s1 + $0x200] ss:$8 sps:$4 sm:$0xff]  }
  0x36   : > { %918 = vmatprep.subr.bf16.mxu1 %v1417_v41  ;;  %v1482_v41 = vld [vmem:[%s1939_s1 + $0x2f4] ss:$8 sps:$4 sm:$0xff]  }
  0x38   : > { %876 = vmatpush2.bf16.msra.mxu0 %v1419_v42  ;;  %v1480_v42 = vld [vmem:[%s1939_s1 + $0x2f0] ss:$8 sps:$4 sm:$0xff]  }
  0x39   : > { %919 = vmatpush2.bf16.msra.mxu1 %v1420_v43  ;;  %877 = vmatprep.subr.bf16.mxu0 %v1421_v44  ;;  %v1485_v43 = vld [vmem:[%s1939_s1 + $0x2e4] ss:$8 sps:$4 sm:$0xff]   ;;  %v1483_v44 = vld [vmem:[%s1939_s1 + $0x2e0] ss:$8 sps:$4 sm:$0xff]  }
  0x3a   : > { %920 = vmatprep.subr.bf16.mxu1 %v1423_v45  ;;  %v1488_v45 = vld [vmem:[%s1939_s1 + $0x2d4] ss:$8 sps:$4 sm:$0xff]  }
  0x3c   : > { %878 = vmatpush2.bf16.msra.mxu0 %v1425_v46  ;;  %v1486_v46 = vld [vmem:[%s1939_s1 + $0x2d0] ss:$8 sps:$4 sm:$0xff]  }
  0x3d   : > { %921 = vmatpush2.bf16.msra.mxu1 %v1426_v49  ;;  %879 = vmatprep.subr.bf16.mxu0 %v1427_v51  ;;  %v1494_v49 = vld [vmem:[%s1939_s1 + $0x2b4] ss:$8 sps:$4 sm:$0xff]   ;;  %v1497_v51 = vld [vmem:[%s1939_s1 + $0x2a4] ss:$8 sps:$4 sm:$0xff]  }
  0x3e   : > { %922 = vmatprep.subr.bf16.mxu1 %v1429_v52  ;;  %v1495_v52 = vld [vmem:[%s1939_s1 + $0x2a0] ss:$8 sps:$4 sm:$0xff]  }
  0x40   : > { %880 = vmatpush2.bf16.msra.mxu0 %v1431_v56  ;;  %v1501_v56 = vld [vmem:[%s1939_s1 + $0x280] ss:$8 sps:$4 sm:$0xff]  }
  0x41   : > { %923 = vmatpush2.bf16.msra.mxu1 %v1432_v57  ;;  %881 = vmatprep.subr.bf16.mxu0 %v1433_v59 }
  0x42   : > { %924 = vmatprep.subr.bf16.mxu1 %v1435_v62 }
  0x44   : > { %882 = vmatpush2.bf16.msra.mxu0 %v1437_v2 }
  0x45   : > { %925 = vmatpush2.bf16.msra.mxu1 %v1438_v3  ;;  %883 = vmatprep.subr.bf16.mxu0 %v1439_v6 }
  0x46   : > { %926 = vmatprep.subr.bf16.mxu1 %v1441_v8 }
  0x48   : > { %884 = vmatpush2.bf16.msra.mxu0 %v1443_v10 }
  0x49   : > { %927 = vmatpush2.bf16.msra.mxu1 %v1444_v11  ;;  %885 = vmatprep.subr.bf16.mxu0 %v1445_v12 }
  0x4a   : > { %928 = vmatprep.subr.bf16.mxu1 %v1447_v16 }
  0x4c   : > { %886 = vmatpush2.bf16.msra.mxu0 %v1449_v17 }
  0x4d   : > { %929 = vmatpush2.bf16.msra.mxu1 %v1450_v18  ;;  %941 = vmatprep.subr.bf16.mxu0 %v1458_v21 }
  0x4f   : > { %888 = vmatmul.mubr.bf16.vlgmr.msra.gmra.mxu0 %v1454_v61 }
  0x50   : > { %931 = vmatmul.mubr.bf16.vlgmr.msra.gmra.mxu1 %v255_v24  ;;  %942 = vmatpush1.bf16.msra.mxu0 %v1456_v25 }
  0x51   : > { %973 = vmatprep.mubr.bf16.mxu0 %v276_v27  ;;  %943 = vmatprep.subr.bf16.mxu0 %v1461_v26 }
  0x54   : > { %944 = vmatpush1.bf16.msra.mxu0 %v1459_v28 }
  0x55   : > { %945 = vmatprep.subr.bf16.mxu0 %v1464_v29 }
  0x58   : > { %946 = vmatpush1.bf16.msra.mxu0 %v1462_v30 }
  0x59   : > { %947 = vmatprep.subr.bf16.mxu0 %v1467_v31 }
  0x5c   : > { %948 = vmatpush1.bf16.msra.mxu0 %v1465_v32 }
  0x5d   : > { %949 = vmatprep.subr.bf16.mxu0 %v1470_v33 }
  0x60   : > { %950 = vmatpush1.bf16.msra.mxu0 %v1468_v34 }
  0x61   : > { %951 = vmatprep.subr.bf16.mxu0 %v1473_v35 }
  0x64   : > { %952 = vmatpush1.bf16.msra.mxu0 %v1471_v36 }
  0x65   : > { %953 = vmatprep.subr.bf16.mxu0 %v1476_v37 }
  0x68   : > { %954 = vmatpush1.bf16.msra.mxu0 %v1474_v38 }
  0x69   : > { %955 = vmatprep.subr.bf16.mxu0 %v1479_v39 }
  0x6c   : > { %956 = vmatpush1.bf16.msra.mxu0 %v1477_v40 }
  0x6d   : > { %957 = vmatprep.subr.bf16.mxu0 %v1482_v41 }
  0x70   : > { %958 = vmatpush2.bf16.msra.mxu0 %v1480_v42 }
  0x71   : > { %959 = vmatprep.subr.bf16.mxu0 %v1485_v43 }
  0x74   : > { %960 = vmatpush2.bf16.msra.mxu0 %v1483_v44 }
  0x75   : > { %961 = vmatprep.subr.bf16.mxu0 %v1488_v45 }
  0x78   : > { %962 = vmatpush2.bf16.msra.mxu0 %v1486_v46 }
  0x79   : > { %963 = vmatprep.subr.bf16.mxu0 %v1491_v47 }
  0x7c   : > { %964 = vmatpush2.bf16.msra.mxu0 %v1489_v48 }
  0x7d   : > { %965 = vmatprep.subr.bf16.mxu0 %v1494_v49 }
  0x80   : > { %966 = vmatpush2.bf16.msra.mxu0 %v1492_v50 }
  0x81   : > { %967 = vmatprep.subr.bf16.mxu0 %v1497_v51 }
  0x84   : > { %968 = vmatpush2.bf16.msra.mxu0 %v1495_v52 }
  0x85   : > { %969 = vmatprep.subr.bf16.mxu0 %v1500_v53 }
  0x88   : > { %970 = vmatpush2.bf16.msra.mxu0 %v1498_v54 }
  0x89   : > { %971 = vmatprep.subr.bf16.mxu0 %v1503_v55 }
  0x8c   : > { %972 = vmatpush2.bf16.msra.mxu0 %v1501_v56 }
  0x8f   : > { %974 = vmatmul.mubr.bf16.vlgmr.msra.gmra.mxu0 %v1791_v9 }
 0x10f   : > { %v889_v57 = vpop.f32.mrf.mxu0 }
 0x110   : > { %v932_v58 = vpop.f32.mrf.mxu1 }
 0x111   : > { %v891_v59 = vpop.f32.mrf.mxu0  ;;  %v933_v1 = vadd.f32 %v932_v58, %v889_v57 }
 0x112   : > { %v934_v60 = vpop.f32.mrf.mxu1 }
 0x113   : > { %v893_v61 = vpop.f32.mrf.mxu0  ;;  %v935_v2 = vadd.f32 %v934_v60, %v891_v59 }
 0x114   : > { %v936_v62 = vpop.f32.mrf.mxu1 }
 0x115   : > { %v895_v63 = vpop.f32.mrf.mxu0  ;;  %v937_v5 = vadd.f32 %v936_v62, %v893_v61 }
 0x116   : > { %v938_v3 = vpop.f32.mrf.mxu1 }
 0x117   : > { %v939_v9 = vadd.f32 %v938_v3, %v895_v63 }
 0x14f   : > { %v975_v0 = vpop.f32.mrf.mxu0 }
 0x150   : > { %v976_v6 = vadd.f32 %v975_v0, %v933_v1 }
 0x151   : > { %v977_v4 = vpop.f32.mrf.mxu0 }
 0x152   : > { %v978_v7 = vadd.f32 %v977_v4, %v935_v2  ;;  %v1012_v13 = vmul.f32 %v976_v6, %v976_v6 }
 0x153   : > { %v979_v8 = vpop.f32.mrf.mxu0 }
 0x154   : > { %v1312_v10 = vpack.c.bf16 %v978_v7, %v976_v6  ;;  %v980_v11 = vadd.f32 %v979_v8, %v937_v5  ;;  %v1013_v21 = vmul.f32 %v978_v7, %v978_v7 }
 0x155   : > { %v981_v12 = vpop.f32.mrf.mxu0 }
 0x156   : > { %996 = vst [vmem:[%s208_s24] sm:$0xff] %v1312_v10  ;;  %v998_v14 = vadd.f32 %v980_v11, %v976_v6  ;;  %v1014_v15 = vmul.f32 %v980_v11, %v980_v11  ;;  %v982_v16 = vadd.f32 %v981_v12, %v939_v9 }
 0x158   : > { %v999_v17 = vrot.slane %v998_v14, 4  ;;  %v1016_v18 = vadd.f32 %v1014_v15, %v1012_v13  ;;  %v1313_v19 = vpack.c.bf16 %v982_v16, %v980_v11  ;;  %v1005_v20 = vadd.f32 %v982_v16, %v978_v7 }
 0x159   : > { %v1015_v22 = vmul.f32 %v982_v16, %v982_v16 }
 0x15a   : > { %v1000_v23 = vadd.f32 %v999_v17, %v998_v14  ;;  %v1017_v24 = vrot.slane %v1016_v18, 4  ;;  %997 = vst [vmem:[%s208_s24 + $0x8] sm:$0xff] %v1313_v19  ;;  %v1006_v25 = vrot.slane %v1005_v20, 4 }
 0x15b   : > { %v1023_v26 = vadd.f32 %v1015_v22, %v1013_v21 }
 0x15c   : > { %v1001_v27 = vrot.slane %v1000_v23, 2  ;;  %v1018_v28 = vadd.f32 %v1017_v24, %v1016_v18  ;;  %v1007_v29 = vadd.f32 %v1006_v25, %v1005_v20 }
 0x15d   : > { %v1024_v30 = vrot.slane %v1023_v26, 4 }
 0x15e   : > { %v1019_v31 = vrot.slane %v1018_v28, 2  ;;  %v1008_v32 = vrot.slane %v1007_v29, 2  ;;  %v1002_v33 = vadd.f32 %v1001_v27, %v1000_v23 }
 0x15f   : > { %v1025_v34 = vadd.f32 %v1024_v30, %v1023_v26 }
 0x160   : > { %v1020_v35 = vadd.f32 %v1019_v31, %v1018_v28  ;;  %v1009_v36 = vadd.f32 %v1008_v32, %v1007_v29  ;;  %v1003_v39 = vrot.slane %v1002_v33, 1 }
 0x161   : > { %v1026_v37 = vrot.slane %v1025_v34, 2 }
 0x162   : > { %v1021_v38 = vrot.slane %v1020_v35, 1  ;;  %v1010_v40 = vrot.slane %v1009_v36, 1  ;;  %v1004_v44 = vadd.f32 %v1003_v39, %v1002_v33 }
 0x163   : > { %v1027_v41 = vadd.f32 %v1026_v37, %v1025_v34 }
 0x164   : > { %v1022_v42 = vadd.f32 %v1021_v38, %v1020_v35  ;;  %v1011_v45 = vadd.f32 %v1010_v40, %v1009_v36 }
 0x165   : > { %v1028_v43 = vrot.slane %v1027_v41, 1 }
 0x166   : > { %v1031_v47 = vsel %vm1030_vm2, %v1004_v44, %v1022_v42 }
 0x167   : > { %v1029_v46 = vadd.f32 %v1028_v43, %v1027_v41 }
 0x169   : > { %v1032_v48 = vsel %vm1030_vm2, %v1011_v45, %v1029_v46 }
 0x16a   : > { %v1035_v49 = vcombine.low %v1031_v47, %v1032_v48 }
 0x16c   : > { %1308 = vst.sshfl [vmem:[%s218_s12] sm:$0x33 pattern:$0x76325410] %v1035_v49 }
 0x16d PF: > { %s14_s16 = sadd.s32 1, %s1542_s16   ;;  %s1942_s12 = smov %s1534_s14 }
 0x16e   : > { %p11_p8 = scmp.ge.s32.totalorder %s14_s16, 6   ;;  %s1943_s13 = smov %s1538_s15 }
 0x16f   : > { %s1944_s14 = smov %s1947_s17  ;;  %s1945_s15 = smov %s1951_s18 }
 0x170   :  { %13 = sbr.rel (!%p11_p8) target bundleno = 3 (0x3), region = 71 }

// kernel: up_forward.4
= control target key start
LH: loop header
LB: loop body
LE: loop exit
PB: predicated region body
PF: predicated region fallthrough
CT: control target
= control target key end

     0   :  { %s1743_s18 = smov 0   ;;  %s1745_s19 = smov 0   ;;  %s2199_s0 = inlined_call_operand.vmem [shape: bf16[2,34,256], index: 0, kind: input, shape index: {}]   ;;  %s2200_s1 = inlined_call_operand.vmem [shape: f32[1,256], index: 1, kind: input, shape index: {}]   ;;  %s2201_s2 = inlined_call_operand.vmem [shape: f32[1,256], index: 2, kind: input, shape index: {}]   ;;  %s2202_s3 = inlined_call_operand.vmem [shape: bf16[768,256], index: 3, kind: input, shape index: {}]   ;;  %s2203_s4 = inlined_call_operand.vmem [shape: bf16[2,32,256], index: 4, kind: output, shape index: {0}]   ;;  %s2204_s5 = inlined_call_operand.vmem [shape: f32[2,2,2,256], index: 5, kind: output, shape index: {1}]  }
   0x1   :  { %s1747_s20 = smov 0   ;;  %s1749_s21 = smov 0  }
   0x2   :  { %s1751_s22 = smov 0  }
   0x3 LB: > { %s25_s23 = sadd.s32 1, %s1703_s20  ;;  %s28_s24 = sadd.s32 1, %s1707_s21  ;;  %s1711_s22 = sphi %s1751_s22, %s16_s22   ;;  %s1707_s21 = sphi %s1749_s21, %s2214_s21   ;;  %s1703_s20 = sphi %s1747_s20, %s2213_s20   ;;  %s1699_s19 = sphi %s1745_s19, %s2212_s19   ;;  %s1695_s18 = sphi %s1743_s18, %s2211_s18  }
   0x4   : > { %p26_p0 = scmp.ge.s32.totalorder %s25_s23, 2  ;;  %p1348_p1 = scmp.ge.s32.totalorder %s1711_s22, 1 }
   0x5   : > { %p206_p2 = scmp.lt.s32.totalorder %s1711_s22, 5 }
   0x6   : > { %s2216_s23 = smov (%p26_p0, %s25_s23), 0  ;;  %s2218_s24 = smov (!%p26_p0, %s28_s24), %s1707_s21 }
   0x7   : > { %p207_p3 = pnand %p1348_p1, %p206_p2  ;;  %p30_p4 = scmp.ge.s32.totalorder %s2218_s24, 2 }
   0x8   : > { %p248_p5 = scmp.lt.s32.totalorder (!%p207_p3), %s1699_s19, 1  ;;  %s1357_s14 = sshll.u32 (!%p207_p3), %s1695_s18, 4 }
   0x9   : > { %s2220_s24 = smov (%p30_p4, %s2218_s24), 0  ;;  %210 = sbr.rel (%p207_p3) target bundleno = 365 (0x16d), region = 36 }
   0xa   : > { %s1350_s6 = sshll.u32 (!%p207_p3), %s1695_s18, 1  ;;  %p266_p7 = scmp.lt.s32.totalorder (!%p207_p3), %s1695_s18, 1 }
   0xb   : > { %p256_p6 = scmp.lt.s32.totalorder (!%p207_p3), %s1350_s6, 3 }
   0xe   : > { %v1517_v0 = vld [vmem:[%s2202_s3 + $0x74] ss:$8 sps:$4 sm:$0xff]   ;;  %v1521_v2 = vld [vmem:[%s2202_s3 + $0x70] ss:$8 sps:$4 sm:$0xff]   ;;  %v1523_v4 = vld [vmem:[%s2202_s3 + $0x64] ss:$8 sps:$4 sm:$0xff]   ;;  %v290_v38 = vlaneseq }
   0xf   : > { %v1519_v1 = vld [vmem:[%s2202_s3 + $0x174] ss:$8 sps:$4 sm:$0xff]   ;;  %1009 = vmatprep.subr.bf16.mxu0 %v1517_v0  ;;  %v1522_v3 = vld [vmem:[%s2202_s3 + $0x170] ss:$8 sps:$4 sm:$0xff]   ;;  %v1525_v5 = vld [vmem:[%s2202_s3 + $0x164] ss:$8 sps:$4 sm:$0xff]  }
  0x10   : > { %1052 = vmatprep.subr.bf16.mxu1 %v1519_v1  ;;  %1010 = vmatpush1.bf16.msra.mxu0 %v1521_v2  ;;  %v1527_v6 = vld [vmem:[%s2202_s3 + $0x60] ss:$8 sps:$4 sm:$0xff]   ;;  %v1529_v8 = vld [vmem:[%s2202_s3 + $0x54] ss:$8 sps:$4 sm:$0xff]   ;;  %v1533_v10 = vld [vmem:[%s2202_s3 + $0x50] ss:$8 sps:$4 sm:$0xff]  }
  0x11   : > { %1053 = vmatpush1.bf16.msra.mxu1 %v1522_v3  ;;  %1011 = vmatprep.subr.bf16.mxu0 %v1523_v4  ;;  %v1528_v7 = vld [vmem:[%s2202_s3 + $0x160] ss:$8 sps:$4 sm:$0xff]   ;;  %v1531_v9 = vld [vmem:[%s2202_s3 + $0x154] ss:$8 sps:$4 sm:$0xff]   ;;  %v1534_v11 = vld [vmem:[%s2202_s3 + $0x150] ss:$8 sps:$4 sm:$0xff]  }
  0x12   : > { %1054 = vmatprep.subr.bf16.mxu1 %v1525_v5  ;;  %v1535_v12 = vld [vmem:[%s2202_s3 + $0x44] ss:$8 sps:$4 sm:$0xff]   ;;  %v1539_v14 = vld [vmem:[%s2202_s3 + $0x40] ss:$8 sps:$4 sm:$0xff]   ;;  %v1541_v16 = vld [vmem:[%s2202_s3 + $0x34] ss:$8 sps:$4 sm:$0xff]  }
  0x13   : > { %v1537_v13 = vld [vmem:[%s2202_s3 + $0x144] ss:$8 sps:$4 sm:$0xff]   ;;  %v1540_v15 = vld [vmem:[%s2202_s3 + $0x140] ss:$8 sps:$4 sm:$0xff]   ;;  %v1543_v17 = vld [vmem:[%s2202_s3 + $0x134] ss:$8 sps:$4 sm:$0xff]  }
  0x14   : > { %1012 = vmatpush1.bf16.msra.mxu0 %v1527_v6  ;;  %v1545_v18 = vld [vmem:[%s2202_s3 + $0x30] ss:$8 sps:$4 sm:$0xff]   ;;  %v1547_v20 = vld [vmem:[%s2202_s3 + $0x24] ss:$8 sps:$4 sm:$0xff]   ;;  %v1551_v22 = vld [vmem:[%s2202_s3 + $0x20] ss:$8 sps:$4 sm:$0xff]  }
  0x15   : > { %1055 = vmatpush1.bf16.msra.mxu1 %v1528_v7  ;;  %1013 = vmatprep.subr.bf16.mxu0 %v1529_v8  ;;  %v1546_v19 = vld [vmem:[%s2202_s3 + $0x130] ss:$8 sps:$4 sm:$0xff]   ;;  %v1549_v21 = vld [vmem:[%s2202_s3 + $0x124] ss:$8 sps:$4 sm:$0xff]   ;;  %v1552_v23 = vld [vmem:[%s2202_s3 + $0x120] ss:$8 sps:$4 sm:$0xff]  }
  0x16   : > { %1056 = vmatprep.subr.bf16.mxu1 %v1531_v9  ;;  %v1553_v24 = vld [vmem:[%s2202_s3 + $0x14] ss:$8 sps:$4 sm:$0xff]   ;;  %v1557_v26 = vld [vmem:[%s2202_s3 + $0x10] ss:$8 sps:$4 sm:$0xff]   ;;  %v1559_v28 = vld [vmem:[%s2202_s3 + $0x4] ss:$8 sps:$4 sm:$0xff]  }
  0x17   : > { %v1555_v25 = vld [vmem:[%s2202_s3 + $0x114] ss:$8 sps:$4 sm:$0xff]   ;;  %v1558_v27 = vld [vmem:[%s2202_s3 + $0x110] ss:$8 sps:$4 sm:$0xff]   ;;  %v1561_v29 = vld [vmem:[%s2202_s3 + $0x104] ss:$8 sps:$4 sm:$0xff]  }
  0x18   : > { %1014 = vmatpush1.bf16.msra.mxu0 %v1533_v10  ;;  %v1563_v30 = vld [vmem:[%s2202_s3] ss:$8 sps:$4 sm:$0xff]   ;;  %v1565_v32 = vld [vmem:[%s2202_s3 + $0xf4] ss:$8 sps:$4 sm:$0xff]   ;;  %s2222_s19 = smov (!%p248_p5, %s1699_s19), 1  ;;  %v1912_v43 = vshrl.u32 %v290_v38, 7 }
  0x19   : > { %1057 = vmatpush1.bf16.msra.mxu1 %v1534_v11  ;;  %1015 = vmatprep.subr.bf16.mxu0 %v1535_v12  ;;  %v1564_v31 = vld [vmem:[%s2202_s3 + $0x100] ss:$8 sps:$4 sm:$0xff]   ;;  %v1567_v33 = vld [vmem:[%s2202_s3 + $0x1f4] ss:$8 sps:$4 sm:$0xff]   ;;  %v1569_v34 = vld [vmem:[%s2202_s3 + $0xf0] ss:$8 sps:$4 sm:$0xff]  }
  0x1a   : > { %1058 = vmatprep.subr.bf16.mxu1 %v1537_v13  ;;  %v1570_v35 = vld [vmem:[%s2202_s3 + $0x1f0] ss:$8 sps:$4 sm:$0xff]   ;;  %v1571_v36 = vld [vmem:[%s2202_s3 + $0xe4] ss:$8 sps:$4 sm:$0xff]   ;;  %s1476_s27 = smul.u32 40, %s2222_s19  ;;  %v292_v48 = vsub.s32 0, %v1912_v43 }
  0x1b   : > { %v1573_v37 = vld [vmem:[%s2202_s3 + $0x1e4] ss:$8 sps:$4 sm:$0xff]   ;;  %v1575_v39 = vld [vmem:[%s2202_s3 + $0xe0] ss:$8 sps:$4 sm:$0xff]   ;;  %v1577_v41 = vld [vmem:[%s2202_s3 + $0xd4] ss:$8 sps:$4 sm:$0xff]  }
  0x1c   : > { %1016 = vmatpush1.bf16.msra.mxu0 %v1539_v14  ;;  %v1576_v40 = vld [vmem:[%s2202_s3 + $0x1e0] ss:$8 sps:$4 sm:$0xff]   ;;  %s252_s13 = scalar_lea.vmem %s2199_s0, %s1476_s27  ;;  %v1579_v42 = vld [vmem:[%s2202_s3 + $0x1d4] ss:$8 sps:$4 sm:$0xff]   ;;  %v1581_v44 = vld [vmem:[%s2202_s3 + $0xd0] ss:$8 sps:$4 sm:$0xff]  }
  0x1d   : > { %1059 = vmatpush1.bf16.msra.mxu1 %v1540_v15  ;;  %1017 = vmatprep.subr.bf16.mxu0 %v1541_v16  ;;  %v1582_v45 = vld [vmem:[%s2202_s3 + $0x1d0] ss:$8 sps:$4 sm:$0xff]   ;;  %s278_s29 = scalar_lea.vmem %s252_s13, %s1357_s14  ;;  %v1583_v46 = vld [vmem:[%s2202_s3 + $0xc4] ss:$8 sps:$4 sm:$0xff]   ;;  %v296_v49 = vsub.s32 1, %v1912_v43  ;;  %s2224_s6 = smov (!%p256_p6, %s1350_s6), 3 }
  0x1e   : > { %1060 = vmatprep.subr.bf16.mxu1 %v1543_v17  ;;  %v1585_v47 = vld [vmem:[%s2202_s3 + $0x1c4] ss:$8 sps:$4 sm:$0xff]   ;;  %v1587_v50 = vld [vmem:[%s2202_s3 + $0xc0] ss:$8 sps:$4 sm:$0xff]   ;;  %v281_v53 = vld [vmem:[%s278_s29 + $0x10] sm:$0x11] }
  0x1f   : > { %v279_v51 = vld [vmem:[%s278_s29] sm:$0xff]  ;;  %v280_v52 = vld [vmem:[%s278_s29 + $0x8] sm:$0xff]  ;;  %v286_v60 = vunpack.c.l.bf16 %v281_v53  ;;  %v287_v61 = vunpack.c.h.bf16 %v281_v53  ;;  %v1589_v63 = vld [vmem:[%s2202_s3 + $0xb4] ss:$8 sps:$4 sm:$0xff]   ;;  %s1351_s7 = sshll.u32 %s2224_s6, 1  ;;  %s1352_s8 = sshll.u32 %s2222_s19, 3 }
  0x20   : > { %1018 = vmatpush1.bf16.msra.mxu0 %v1545_v18  ;;  %v282_v54 = vunpack.c.l.bf16 %v279_v51  ;;  %v283_v55 = vunpack.c.h.bf16 %v279_v51  ;;  %v288_v56 = vld [vmem:[%s2200_s1] sm:$0x3]  ;;  %v284_v58 = vunpack.c.l.bf16 %v280_v52  ;;  %v285_v59 = vunpack.c.h.bf16 %v280_v52  ;;  %v1591_v0 = vld [vmem:[%s2202_s3 + $0x1b4] ss:$8 sps:$4 sm:$0xff]   ;;  %v1593_v5 = vld [vmem:[%s2202_s3 + $0xb0] ss:$8 sps:$4 sm:$0xff]   ;;  %s260_s9 = sadd.s32 %s1352_s8, %s1351_s7 }
  0x21   : > { %1061 = vmatpush1.bf16.msra.mxu1 %v1546_v19  ;;  %1019 = vmatprep.subr.bf16.mxu0 %v1547_v20  ;;  %v1588_v57 = vld [vmem:[%s2202_s3 + $0x1c0] ss:$8 sps:$4 sm:$0xff]   ;;  %v293_v1 = vrot.slane %v288_v56, %v292_v48  ;;  %v297_v2 = vrot.slane %v288_v56, %v296_v49  ;;  %v1594_v10 = vld [vmem:[%s2202_s3 + $0x1b0] ss:$8 sps:$4 sm:$0xff]   ;;  %v1595_v13 = vld [vmem:[%s2202_s3 + $0xa4] ss:$8 sps:$4 sm:$0xff]  }
  0x22   : > { %1062 = vmatprep.subr.bf16.mxu1 %v1549_v21  ;;  %v306_v62 = vld [vmem:[%s2201_s2] sm:$0x3]  ;;  %v1597_v14 = vld [vmem:[%s2202_s3 + $0x1a4] ss:$8 sps:$4 sm:$0xff]   ;;  %s1353_s10 = sshll.u32 %s260_s9, 2  ;;  %s2226_s18 = smov (!%p266_p7, %s1695_s18), 1 }
  0x23   : > { %v311_v3 = vrot.slane %v306_v62, %v292_v48  ;;  %v315_v4 = vrot.slane %v306_v62, %v296_v49  ;;  %v300_v6 = vmul.f32 %v293_v1, %v282_v54  ;;  %v301_v7 = vmul.f32 %v297_v2, %v283_v55  ;;  %v1599_v18 = vld [vmem:[%s2202_s3 + $0xa0] ss:$8 sps:$4 sm:$0xff]   ;;  %v1607_v38 = vld [vmem:[%s2202_s3 + $0x84] ss:$8 sps:$4 sm:$0xff]   ;;  %s262_s13 = scalar_lea.vmem %s2203_s4, %s1353_s10  ;;  %s1355_s15 = sshll.u32 %s2222_s19, 2 }
  0x24   : > { %1020 = vmatpush1.bf16.msra.mxu0 %v1551_v22  ;;  %v302_v8 = vmul.f32 %v293_v1, %v284_v58  ;;  %v303_v9 = vmul.f32 %v297_v2, %v285_v59  ;;  %v304_v11 = vmul.f32 %v293_v1, %v286_v60  ;;  %v305_v12 = vmul.f32 %v297_v2, %v287_v61  ;;  %v1600_v21 = vld [vmem:[%s2202_s3 + $0x1a0] ss:$8 sps:$4 sm:$0xff]   ;;  %v1642_v54 = vld [vmem:[%s2202_s3 + $0x2e4] ss:$8 sps:$4 sm:$0xff]   ;;  %v1651_v59 = vld [vmem:[%s2202_s3 + $0x2b4] ss:$8 sps:$4 sm:$0xff]  }
  0x25   : > { %1063 = vmatpush1.bf16.msra.mxu1 %v1552_v23  ;;  %1021 = vmatprep.subr.bf16.mxu0 %v1553_v24  ;;  %v1960_v15 = vadd.f32 %v311_v3, %v300_v6  ;;  %v1962_v16 = vadd.f32 %v315_v4, %v301_v7  ;;  %v1601_v24 = vld [vmem:[%s2202_s3 + $0x94] ss:$8 sps:$4 sm:$0xff]   ;;  %s1354_s16 = sshll.u32 %s2226_s18, 1 }
  0x26   : > { %1064 = vmatprep.subr.bf16.mxu1 %v1555_v25  ;;  %v1964_v17 = vadd.f32 %v311_v3, %v302_v8  ;;  %v1969_v19 = vadd.f32 %v315_v4, %v303_v9  ;;  %v1971_v20 = vadd.f32 %v315_v4, %v305_v12  ;;  %v1977_v23 = vadd.f32 %v311_v3, %v304_v11 }
  0x27   : > { %v330_v22 = vmin.f32 %v1960_v15, 0.0  ;;  %v331_v25 = vmin.f32 %v1962_v16, 0.0  ;;  %vm324_vm2 = vcmp.gt.f32.partialorder %v1960_v15, 0.0  ;;  %vm325_vm5 = vcmp.gt.f32.partialorder %v1962_v16, 0.0 }
  0x28   : > { %1022 = vmatpush1.bf16.msra.mxu0 %v1557_v26  ;;  %v332_v26 = vmin.f32 %v1964_v17, 0.0  ;;  %vm326_vm7 = vcmp.gt.f32.partialorder %v1964_v17, 0.0  ;;  %vm327_vm10 = vcmp.gt.f32.partialorder %v1969_v19, 0.0  ;;  %vm329_vm12 = vcmp.gt.f32.partialorder %v1971_v20, 0.0 }
  0x29   : > { %1065 = vmatpush1.bf16.msra.mxu1 %v1558_v27  ;;  %1023 = vmatprep.subr.bf16.mxu0 %v1559_v28  ;;  %v333_v27 = vmin.f32 %v1969_v19, 0.0  ;;  %v1603_v28 = vld [vmem:[%s2202_s3 + $0x194] ss:$8 sps:$4 sm:$0xff]   ;;  %vm328_vm14 = vcmp.gt.f32.partialorder %v1977_v23, 0.0 }
  0x2a   : > { %1066 = vmatprep.subr.bf16.mxu1 %v1561_v29  ;;  %v336_v29 = vmul.f32 1.442695, %v330_v22 }
  0x2c   : > { %1024 = vmatpush1.bf16.msra.mxu0 %v1563_v30  ;;  %v335_v30 = vmin.f32 %v1971_v20, 0.0  ;;  %1661 = vpow2.f32 %v336_v29 }
  0x2d   : > { %1067 = vmatpush1.bf16.msra.mxu1 %v1564_v31  ;;  %1025 = vmatprep.subr.bf16.mxu0 %v1565_v32  ;;  %v338_v31 = vmul.f32 1.442695, %v331_v25  ;;  %v340_v32 = vmul.f32 1.442695, %v332_v26 }
  0x2e   : > { %1068 = vmatprep.subr.bf16.mxu1 %v1567_v33  ;;  %v342_v33 = vmul.f32 1.442695, %v333_v27 }
  0x2f   : > { %1663 = vpow2.f32 %v338_v31 }
  0x30   : > { %1026 = vmatpush2.bf16.msra.mxu0 %v1569_v34  ;;  %v1605_v34 = vld [vmem:[%s2202_s3 + $0x90] ss:$8 sps:$4 sm:$0xff]   ;;  %1665 = vpow2.f32 %v340_v32  ;;  %v1621_v32 = vld [vmem:[%s2202_s3 + $0x254] ss:$8 sps:$4 sm:$0xff]  }
  0x31   : > { %1069 = vmatpush2.bf16.msra.mxu1 %v1570_v35  ;;  %1027 = vmatprep.subr.bf16.mxu0 %v1571_v36  ;;  %v346_v35 = vmul.f32 1.442695, %v335_v30  ;;  %v334_v36 = vmin.f32 %v1977_v23, 0.0  ;;  %1667 = vpow2.f32 %v342_v33 }
  0x32   : > { %1070 = vmatprep.subr.bf16.mxu1 %v1573_v37  ;;  %v1606_v37 = vld [vmem:[%s2202_s3 + $0x190] ss:$8 sps:$4 sm:$0xff]  }
  0x33   : > { %1669 = vpow2.f32 %v346_v35 }
  0x34   : > { %1028 = vmatpush2.bf16.msra.mxu0 %v1575_v39  ;;  %v1609_v39 = vld [vmem:[%s2202_s3 + $0x184] ss:$8 sps:$4 sm:$0xff]  }
  0x35   : > { %1071 = vmatpush2.bf16.msra.mxu1 %v1576_v40  ;;  %1029 = vmatprep.subr.bf16.mxu0 %v1577_v41  ;;  %v344_v40 = vmul.f32 1.442695, %v334_v36  ;;  %v364_v41 = vstv %s1357_s14  ;;  %s270_s14 = sadd.s32 %s1355_s15, %s1354_s16 }
  0x36   : > { %1072 = vmatprep.subr.bf16.mxu1 %v1579_v42  ;;  %v1611_v42 = vld [vmem:[%s2202_s3 + $0x80] ss:$8 sps:$4 sm:$0xff]   ;;  %v365_v48 = vadd.s32 %v364_v41, %v1912_v43  ;;  %s1356_s17 = sshll.u32 %s270_s14, 1 }
  0x37   : > { %1671 = vpow2.f32 %v344_v40  ;;  %s272_s19 = scalar_lea.vmem %s2204_s5, %s1356_s17 }
  0x38   : > { %1030 = vmatpush2.bf16.msra.mxu0 %v1581_v44  ;;  %v1612_v44 = vld [vmem:[%s2202_s3 + $0x180] ss:$8 sps:$4 sm:$0xff]   ;;  %vm368_vm0 = vcmp.ge.s32.totalorder %v365_v48, 1  ;;  %vm371_vm1 = vcmp.le.s32.totalorder %v365_v48, 32  ;;  %v1633_v48 = vld [vmem:[%s2202_s3 + $0x214] ss:$8 sps:$4 sm:$0xff]  }
  0x39   : > { %1073 = vmatpush2.bf16.msra.mxu1 %v1582_v45  ;;  %1031 = vmatprep.subr.bf16.mxu0 %v1583_v46  ;;  %v362_v45 = vadd.s32 8, %v1912_v43  ;;  %v1615_v46 = vld [vmem:[%s2202_s3 + $0x274] ss:$8 sps:$4 sm:$0xff]   ;;  %v1662_v51 = vpop.eup %1661  ;;  %vm2018_vm6 = vmand %vm368_vm0, %vm371_vm1  ;;  %vm424_vm0 = vcmask 1046528   ;;  %vm393_vm1 = vsmask.f32 7424 }
  0x3a   : > { %1074 = vmatprep.subr.bf16.mxu1 %v1585_v47  ;;  %v363_v47 = vadd.s32 16, %v1912_v43  ;;  %v1360_v53 = vadd.f32 -1.0, %v1662_v51  ;;  %v1634_v51 = vld [vmem:[%s2202_s3 + $0x200] ss:$8 sps:$4 sm:$0xff]  }
  0x3b   : > { %v366_v49 = vadd.s32 %v364_v41, %v362_v45  ;;  %v1625_v45 = vld [vmem:[%s2202_s3 + $0x230] ss:$8 sps:$4 sm:$0xff]  }
  0x3c   : > { %1032 = vmatpush2.bf16.msra.mxu0 %v1587_v50  ;;  %v367_v50 = vadd.s32 %v364_v41, %v363_v47  ;;  %v1664_v52 = vpop.eup %1663  ;;  %v354_v58 = vsel %vm324_vm2, %v1960_v15, %v1360_v53  ;;  %v1624_v41 = vld [vmem:[%s2202_s3 + $0x244] ss:$8 sps:$4 sm:$0xff]   ;;  %v1628_v47 = vld [vmem:[%s2202_s3 + $0x220] ss:$8 sps:$4 sm:$0xff]   ;;  %v1637_v53 = vld [vmem:[%s2202_s3 + $0x2f0] ss:$8 sps:$4 sm:$0xff]  }
  0x3d   : > { %1075 = vmatpush2.bf16.msra.mxu1 %v1588_v57  ;;  %1033 = vmatprep.subr.bf16.mxu0 %v1589_v63  ;;  %vm369_vm3 = vcmp.ge.s32.totalorder %v366_v49, 1  ;;  %vm372_vm4 = vcmp.le.s32.totalorder %v366_v49, 32  ;;  %v1666_v43 = vpop.eup %1665  ;;  %v1361_v55 = vadd.f32 -1.0, %v1664_v52  ;;  %v383_v63 = vsel %vm2018_vm6, %v354_v58, 0.0  ;;  %v1631_v49 = vld [vmem:[%s2202_s3 + $0x210] ss:$8 sps:$4 sm:$0xff]  }
  0x3e   : > { %1076 = vmatprep.subr.bf16.mxu1 %v1591_v0  ;;  %vm370_vm8 = vcmp.ge.s32.totalorder %v367_v50, 1  ;;  %vm373_vm9 = vcmp.le.s32.totalorder %v367_v50, 32  ;;  %v1668_v56 = vpop.eup %1667  ;;  %v1362_v57 = vadd.f32 -1.0, %v1666_v43  ;;  %vm2026_vm11 = vmand %vm369_vm3, %vm372_vm4  ;;  %v1636_v50 = vld [vmem:[%s2202_s3 + $0x204] ss:$8 sps:$4 sm:$0xff]   ;;  %vm1184_vm2 = vcmask 1040384  }
  0x3f   : > { %v1363_v61 = vadd.f32 -1.0, %v1668_v56  ;;  %v355_v62 = vsel %vm325_vm5, %v1962_v16, %v1361_v55  ;;  %vm2039_vm13 = vmand %vm370_vm8, %vm373_vm9  ;;  %v1639_v52 = vld [vmem:[%s2202_s3 + $0x2f4] ss:$8 sps:$4 sm:$0xff]   ;;  %v1640_v43 = vld [vmem:[%s2202_s3 + $0x2e0] ss:$8 sps:$4 sm:$0xff]  }
  0x40   : > { %1034 = vmatpush2.bf16.msra.mxu0 %v1593_v5  ;;  %v1670_v60 = vpop.eup %1669  ;;  %v356_v1 = vsel %vm326_vm7, %v1964_v17, %v1362_v57  ;;  %v384_v2 = vsel %vm2018_vm6, %v355_v62, 0.0  ;;  %vm1462_vm15 = vmpackc.low %vm2026_vm11, %vm2018_vm6  ;;  %v1618_v17 = vld [vmem:[%s2202_s3 + $0x264] ss:$8 sps:$4 sm:$0xff]   ;;  %v1645_v55 = vld [vmem:[%s2202_s3 + $0x2d4] ss:$8 sps:$4 sm:$0xff]  }
  0x41   : > { %1077 = vmatpush2.bf16.msra.mxu1 %v1594_v10  ;;  %1035 = vmatprep.subr.bf16.mxu0 %v1595_v13  ;;  %v1365_v3 = vadd.f32 -1.0, %v1670_v60  ;;  %v357_v5 = vsel %vm327_vm10, %v1969_v19, %v1363_v61  ;;  %v385_v6 = vsel %vm2026_vm11, %v356_v1, 0.0  ;;  %v1466_v7 = vpack.c.bf16 %v356_v1, %v354_v58  ;;  %v1613_v13 = vld [vmem:[%s2202_s3 + $0x270] ss:$8 sps:$4 sm:$0xff]   ;;  %v1648_v57 = vld [vmem:[%s2202_s3 + $0x2c4] ss:$8 sps:$4 sm:$0xff]  }
  0x42   : > { %1078 = vmatprep.subr.bf16.mxu1 %v1597_v14  ;;  %v386_v9 = vsel %vm2026_vm11, %v357_v5, 0.0  ;;  %v2053_v10 = vpack.c.bf16 %v385_v6, %v383_v63  ;;  %v1463_v11 = vpack.c.bf16 %v357_v5, %v355_v62  ;;  %v1643_v56 = vld [vmem:[%s2202_s3 + $0x2d0] ss:$8 sps:$4 sm:$0xff]   ;;  %v1646_v58 = vld [vmem:[%s2202_s3 + $0x2c0] ss:$8 sps:$4 sm:$0xff]  }
  0x43   : > { %v359_v12 = vsel %vm329_vm12, %v1971_v20, %v1365_v3  ;;  %v390_v14 = vpack.c.bf16 %v386_v9, %v384_v2  ;;  %v1649_v60 = vld [vmem:[%s2202_s3 + $0x2b0] ss:$8 sps:$4 sm:$0xff]   ;;  %v1654_v61 = vld [vmem:[%s2202_s3 + $0x2a4] ss:$8 sps:$4 sm:$0xff]   ;;  %v1652_v62 = vld [vmem:[%s2202_s3 + $0x2a0] ss:$8 sps:$4 sm:$0xff]  }
  0x44   : > { %1036 = vmatpush2.bf16.msra.mxu0 %v1599_v18  ;;  %v1672_v0 = vpop.eup %1671  ;;  %v388_v15 = vsel %vm2039_vm13, %v359_v12, 0.0  ;;  %1464 = vmatprep.mubr.msk.bf16.mxu0 %vm1462_vm15, %v1463_v11  ;;  %v395_v20 = vshrl.u32 %v2053_v10, 16  ;;  %v1657_v63 = vld [vmem:[%s2202_s3 + $0x294] ss:$8 sps:$4 sm:$0xff]   ;;  %v1660_v1 = vld [vmem:[%s2202_s3 + $0x284] ss:$8 sps:$4 sm:$0xff]  }
  0x45   : > { %1079 = vmatpush2.bf16.msra.mxu1 %v1600_v21  ;;  %1037 = vmatprep.subr.bf16.mxu0 %v1601_v24  ;;  %v1364_v8 = vadd.f32 -1.0, %v1672_v0  ;;  %v392_v18 = vpack.c.bf16 %v388_v15, %v388_v15  ;;  %v397_v21 = vshll.u32 %v2053_v10, 16  ;;  %v407_v22 = vshrl.u32 %v390_v14, 16  ;;  %v1655_v0 = vld [vmem:[%s2202_s3 + $0x290] ss:$8 sps:$4 sm:$0xff]  }
  0x46   : > { %1080 = vmatprep.subr.bf16.mxu1 %v1603_v28  ;;  %v428_v25 = vrot.slane %v390_v14, 1  ;;  %v1616_v28 = vld [vmem:[%s2202_s3 + $0x260] ss:$8 sps:$4 sm:$0xff]   ;;  %v425_v3 = vrot.slane %v2053_v10, 1 }
  0x47   : > { %v358_v16 = vsel %vm328_vm14, %v1977_v23, %v1364_v8  ;;  %v409_v23 = vshll.u32 %v390_v14, 16  ;;  %v414_v26 = vshll.u32 %v392_v18, 16  ;;  %v399_v27 = vrot.slane %v397_v21, 1  ;;  %v1658_v2 = vld [vmem:[%s2202_s3 + $0x280] ss:$8 sps:$4 sm:$0xff]  }
  0x48   : > { %1038 = vmatpush2.bf16.msra.mxu0 %v1605_v34  ;;  %v387_v19 = vsel %vm2039_vm13, %v358_v16, 0.0  ;;  %v429_v29 = vrot.slane %v392_v18, 1 }
  0x49   : > { %1081 = vmatpush2.bf16.msra.mxu1 %v1606_v37  ;;  %1039 = vmatprep.subr.bf16.mxu0 %v1607_v38  ;;  %v2079_v24 = vpack.c.bf16 %v387_v19, %v387_v19  ;;  %v411_v30 = vrot.slane %v409_v23, 1  ;;  %v416_v33 = vrot.slane %v414_v26, 1  ;;  %v400_v34 = vor.u32 %v399_v27, %v395_v20  ;;  %v1619_v38 = vld [vmem:[%s2202_s3 + $0x250] ss:$8 sps:$4 sm:$0xff]  }
  0x4a   : > { %1082 = vmatprep.subr.bf16.mxu1 %v1609_v39  ;;  %v430_v35 = vsel %vm424_vm0, %v428_v25, %v429_v29 }
  0x4b   : > { %v402_v31 = vshll.u32 %v2079_v24, 16  ;;  %v412_v36 = vor.u32 %v411_v30, %v407_v22  ;;  %v426_v4 = vrot.slane %v2079_v24, 1 }
  0x4c   : > { %1040 = vmatpush2.bf16.msra.mxu0 %v1611_v42  ;;  %v1622_v42 = vld [vmem:[%s2202_s3 + $0x240] ss:$8 sps:$4 sm:$0xff]  }
  0x4d   : > { %1083 = vmatpush2.bf16.msra.mxu1 %v1612_v44  ;;  %1095 = vmatprep.subr.bf16.mxu0 %v1615_v46  ;;  %v404_v37 = vrot.slane %v402_v31, 1  ;;  %v417_v39 = vsel %vm393_vm1, %v412_v36, %v416_v33  ;;  %v1627_v44 = vld [vmem:[%s2202_s3 + $0x234] ss:$8 sps:$4 sm:$0xff]   ;;  %v1630_v46 = vld [vmem:[%s2202_s3 + $0x224] ss:$8 sps:$4 sm:$0xff]   ;;  %v427_v5 = vsel %vm424_vm0, %v425_v3, %v426_v4 }
  0x4e   : > { %1084 = vmatprep.mubr.bf16.mxu1 %v417_v39 }
  0x4f   : > { %1467 = vmatmul.mubr.msk.bf16.vlgmr.msra.gmra.mxu0 %vm1462_vm15, %v1466_v7  ;;  %v405_v40 = vsel %vm393_vm1, %v400_v34, %v404_v37 }
  0x50   : > { %1096 = vmatpush1.bf16.msra.mxu0 %v1613_v13  ;;  %1127 = vmatprep.mubr.bf16.mxu0 %v430_v35 }
  0x51   : > { %1097 = vmatprep.subr.bf16.mxu0 %v1618_v17  ;;  %1085 = vmatmul.mubr.bf16.vlgmr.msra.gmra.mxu1 %v405_v40 }
  0x54   : > { %1098 = vmatpush1.bf16.msra.mxu0 %v1616_v28 }
  0x55   : > { %1099 = vmatprep.subr.bf16.mxu0 %v1621_v32 }
  0x58   : > { %1100 = vmatpush1.bf16.msra.mxu0 %v1619_v38 }
  0x59   : > { %1101 = vmatprep.subr.bf16.mxu0 %v1624_v41 }
  0x5c   : > { %1102 = vmatpush1.bf16.msra.mxu0 %v1622_v42 }
  0x5d   : > { %1103 = vmatprep.subr.bf16.mxu0 %v1627_v44 }
  0x60   : > { %1104 = vmatpush1.bf16.msra.mxu0 %v1625_v45 }
  0x61   : > { %1105 = vmatprep.subr.bf16.mxu0 %v1630_v46 }
  0x64   : > { %1106 = vmatpush1.bf16.msra.mxu0 %v1628_v47 }
  0x65   : > { %1107 = vmatprep.subr.bf16.mxu0 %v1633_v48 }
  0x68   : > { %1108 = vmatpush1.bf16.msra.mxu0 %v1631_v49 }
  0x69   : > { %1109 = vmatprep.subr.bf16.mxu0 %v1636_v50 }
  0x6c   : > { %1110 = vmatpush1.bf16.msra.mxu0 %v1634_v51 }
  0x6d   : > { %1111 = vmatprep.subr.bf16.mxu0 %v1639_v52 }
  0x70   : > { %1112 = vmatpush2.bf16.msra.mxu0 %v1637_v53 }
  0x71   : > { %1113 = vmatprep.subr.bf16.mxu0 %v1642_v54 }
  0x74   : > { %1114 = vmatpush2.bf16.msra.mxu0 %v1640_v43 }
  0x75   : > { %1115 = vmatprep.subr.bf16.mxu0 %v1645_v55 }
  0x78   : > { %1116 = vmatpush2.bf16.msra.mxu0 %v1643_v56 }
  0x79   : > { %1117 = vmatprep.subr.bf16.mxu0 %v1648_v57 }
  0x7c   : > { %1118 = vmatpush2.bf16.msra.mxu0 %v1646_v58 }
  0x7d   : > { %1119 = vmatprep.subr.bf16.mxu0 %v1651_v59 }
  0x80   : > { %1120 = vmatpush2.bf16.msra.mxu0 %v1649_v60 }
  0x81   : > { %1121 = vmatprep.subr.bf16.mxu0 %v1654_v61 }
  0x84   : > { %1122 = vmatpush2.bf16.msra.mxu0 %v1652_v62 }
  0x85   : > { %1123 = vmatprep.subr.bf16.mxu0 %v1657_v63 }
  0x88   : > { %1124 = vmatpush2.bf16.msra.mxu0 %v1655_v0 }
  0x89   : > { %1125 = vmatprep.subr.bf16.mxu0 %v1660_v1 }
  0x8c   : > { %1126 = vmatpush2.bf16.msra.mxu0 %v1658_v2 }
  0x8f   : > { %1128 = vmatmul.mubr.bf16.vlgmr.msra.gmra.mxu0 %v427_v5 }
 0x10f   : > { %v1043_v6 = vpop.f32.mrf.mxu0 }
 0x111   : > { %v1086_v7 = vpop.f32.mrf.mxu1  ;;  %v1045_v8 = vpop.f32.mrf.mxu0 }
 0x112   : > { %v1087_v14 = vadd.f32 %v1086_v7, %v1043_v6 }
 0x113   : > { %v1088_v9 = vpop.f32.mrf.mxu1  ;;  %v1047_v11 = vpop.f32.mrf.mxu0 }
 0x114   : > { %v1089_v15 = vadd.f32 %v1088_v9, %v1045_v8 }
 0x115   : > { %v1090_v12 = vpop.f32.mrf.mxu1  ;;  %v1049_v13 = vpop.f32.mrf.mxu0 }
 0x116   : > { %v1091_v18 = vadd.f32 %v1090_v12, %v1047_v11 }
 0x117   : > { %v1092_v16 = vpop.f32.mrf.mxu1 }
 0x118   : > { %v1093_v22 = vadd.f32 %v1092_v16, %v1049_v13 }
 0x14f   : > { %v1129_v10 = vpop.f32.mrf.mxu0 }
 0x150   : > { %v1130_v19 = vadd.f32 %v1129_v10, %v1087_v14 }
 0x151   : > { %v1131_v17 = vpop.f32.mrf.mxu0 }
 0x152   : > { %v1132_v20 = vadd.f32 %v1131_v17, %v1089_v15  ;;  %v1166_v26 = vmul.f32 %v1130_v19, %v1130_v19 }
 0x153   : > { %v1133_v21 = vpop.f32.mrf.mxu0 }
 0x154   : > { %v1474_v23 = vpack.c.bf16 %v1132_v20, %v1130_v19  ;;  %v1134_v24 = vadd.f32 %v1133_v21, %v1091_v18  ;;  %v1167_v34 = vmul.f32 %v1132_v20, %v1132_v20 }
 0x155   : > { %v1135_v25 = vpop.f32.mrf.mxu0 }
 0x156   : > { %1150 = vst [vmem:[%s262_s13] sm:$0xff] %v1474_v23  ;;  %v1152_v27 = vadd.f32 %v1134_v24, %v1130_v19  ;;  %v1168_v28 = vmul.f32 %v1134_v24, %v1134_v24  ;;  %v1136_v29 = vadd.f32 %v1135_v25, %v1093_v22 }
 0x158   : > { %v1153_v30 = vrot.slane %v1152_v27, 4  ;;  %v1170_v31 = vadd.f32 %v1168_v28, %v1166_v26  ;;  %v1475_v32 = vpack.c.bf16 %v1136_v29, %v1134_v24  ;;  %v1159_v33 = vadd.f32 %v1136_v29, %v1132_v20 }
 0x159   : > { %v1169_v35 = vmul.f32 %v1136_v29, %v1136_v29 }
 0x15a   : > { %v1154_v36 = vadd.f32 %v1153_v30, %v1152_v27  ;;  %v1171_v37 = vrot.slane %v1170_v31, 4  ;;  %1151 = vst [vmem:[%s262_s13 + $0x8] sm:$0xff] %v1475_v32  ;;  %v1160_v38 = vrot.slane %v1159_v33, 4 }
 0x15b   : > { %v1177_v39 = vadd.f32 %v1169_v35, %v1167_v34 }
 0x15c   : > { %v1155_v40 = vrot.slane %v1154_v36, 2  ;;  %v1172_v41 = vadd.f32 %v1171_v37, %v1170_v31  ;;  %v1161_v42 = vadd.f32 %v1160_v38, %v1159_v33 }
 0x15d   : > { %v1178_v44 = vrot.slane %v1177_v39, 4 }
 0x15e   : > { %v1173_v45 = vrot.slane %v1172_v41, 2  ;;  %v1162_v46 = vrot.slane %v1161_v42, 2  ;;  %v1156_v47 = vadd.f32 %v1155_v40, %v1154_v36 }
 0x15f   : > { %v1179_v48 = vadd.f32 %v1178_v44, %v1177_v39 }
 0x160   : > { %v1174_v49 = vadd.f32 %v1173_v45, %v1172_v41  ;;  %v1163_v50 = vadd.f32 %v1162_v46, %v1161_v42  ;;  %v1157_v53 = vrot.slane %v1156_v47, 1 }
 0x161   : > { %v1180_v51 = vrot.slane %v1179_v48, 2 }
 0x162   : > { %v1175_v52 = vrot.slane %v1174_v49, 1  ;;  %v1164_v54 = vrot.slane %v1163_v50, 1  ;;  %v1158_v57 = vadd.f32 %v1157_v53, %v1156_v47 }
 0x163   : > { %v1181_v43 = vadd.f32 %v1180_v51, %v1179_v48 }
 0x164   : > { %v1176_v55 = vadd.f32 %v1175_v52, %v1174_v49  ;;  %v1165_v58 = vadd.f32 %v1164_v54, %v1163_v50 }
 0x165   : > { %v1182_v56 = vrot.slane %v1181_v43, 1 }
 0x166   : > { %v1185_v60 = vsel %vm1184_vm2, %v1158_v57, %v1176_v55 }
 0x167   : > { %v1183_v59 = vadd.f32 %v1182_v56, %v1181_v43 }
 0x169   : > { %v1186_v61 = vsel %vm1184_vm2, %v1165_v58, %v1183_v59 }
 0x16a   : > { %v1189_v62 = vcombine.low %v1185_v60, %v1186_v61 }
 0x16c   : > { %1470 = vst.sshfl [vmem:[%s272_s19] sm:$0x33 pattern:$0x76325410] %v1189_v62 }
 0x16d PF: > { %s16_s22 = sadd.s32 1, %s1711_s22   ;;  %s2211_s18 = smov %s1703_s20 }
 0x16e   : > { %p13_p8 = scmp.ge.s32.totalorder %s16_s22, 6   ;;  %s2212_s19 = smov %s1707_s21 }
 0x16f   : > { %s2213_s20 = smov %s2216_s23  ;;  %s2214_s21 = smov %s2220_s24 }
 0x170   :  { %15 = sbr.rel (!%p13_p8) target bundleno = 3 (0x3), region = 79 }

// kernel: up_forward.5
= control target key start
LH: loop header
LB: loop body
LE: loop exit
PB: predicated region body
PF: predicated region fallthrough
CT: control target
= control target key end

     0   :  { %s507_s12 = smov 0   ;;  %s509_s13 = smov 0   ;;  %s568_s0 = inlined_call_operand.vmem [shape: bf16[2,32,256], index: 0, kind: input, shape index: {}]   ;;  %s569_s1 = inlined_call_operand.vmem [shape: f32[1,256], index: 1, kind: input, shape index: {}]   ;;  %s570_s2 = inlined_call_operand.vmem [shape: f32[1,256], index: 2, kind: input, shape index: {}]   ;;  %s571_s3 = inlined_call_operand.vmem [shape: f32[2,32,256], index: 3, kind: output, shape index: {}]  }
   0x1   :  { %s511_s14 = smov 0   ;;  %s513_s15 = smov 0  }
   0x2   :  { %s515_s16 = smov 0  }
   0x3 LB: > { %s22_s17 = sadd.s32 1, %s477_s14  ;;  %s25_s18 = sadd.s32 1, %s481_s15  ;;  %s485_s16 = sphi %s515_s16, %s13_s16   ;;  %s481_s15 = sphi %s513_s15, %s575_s15   ;;  %s477_s14 = sphi %s511_s14, %s574_s14   ;;  %s473_s13 = sphi %s509_s13, %s573_s13   ;;  %s469_s12 = sphi %s507_s12, %s572_s12  }
   0x4   : > { %p23_p0 = scmp.ge.s32.totalorder %s22_s17, 2  ;;  %p384_p1 = scmp.ge.s32.totalorder %s485_s16, 1 }
   0x5   : > { %p159_p2 = scmp.lt.s32.totalorder %s485_s16, 5 }
   0x6   : > { %s577_s17 = smov (%p23_p0, %s22_s17), 0  ;;  %s579_s18 = smov (!%p23_p0, %s25_s18), %s481_s15 }
   0x7   : > { %p160_p3 = pnand %p384_p1, %p159_p2  ;;  %p27_p4 = scmp.ge.s32.totalorder %s579_s18, 2 }
   0x8   : > { %s385_s19 = sshll.u32 (!%p160_p3), %s469_s12, 1  ;;  %p194_p5 = scmp.lt.s32.totalorder (!%p160_p3), %s473_s13, 1 }
   0x9   : > { %s581_s18 = smov (%p27_p4, %s579_s18), 0  ;;  %163 = sbr.rel (%p160_p3) target bundleno = 52 (0x34), region = 32 }
   0xa   : > { %p196_p6 = scmp.lt.s32.totalorder (!%p160_p3), %s385_s19, 3 }
   0xe   : > { %v223_v0 = vlaneseq  ;;  %s583_s13 = smov (!%p194_p5, %s473_s13), 1  ;;  %s585_s19 = smov (!%p196_p6, %s385_s19), 3  ;;  %v221_v4 = vld [vmem:[%s569_s1] sm:$0x3] }
   0xf   : > { %s387_s20 = sshll.u32 %s583_s13, 3  ;;  %s386_s21 = sshll.u32 %s585_s19, 1  ;;  %v237_v5 = vld [vmem:[%s570_s2] sm:$0x3] }
  0x10   : > { %v224_v1 = vshrl.u32 %v223_v0, 7  ;;  %s540_s24 = sadd.s32 %s387_s20, %s386_s21 }
  0x11   : > { %s388_s27 = sshll.u32 %s540_s24, 2  ;;  %s392_s4 = sshll.u32 %s540_s24, 3 }
  0x12   : > { %v225_v2 = vsub.s32 0, %v224_v1  ;;  %v229_v3 = vsub.s32 1, %v224_v1  ;;  %s202_s30 = scalar_lea.vmem %s568_s0, %s388_s27  ;;  %s213_s7 = scalar_lea.vmem %s571_s3, %s392_s4 }
  0x13   : > { %v215_v8 = vld [vmem:[%s202_s30] sm:$0xff]  ;;  %v216_v9 = vld [vmem:[%s202_s30 + $0x8] sm:$0xff] }
  0x14   : > { %v226_v6 = vrot.slane %v221_v4, %v225_v2  ;;  %v230_v7 = vrot.slane %v221_v4, %v229_v3  ;;  %v242_v10 = vrot.slane %v237_v5, %v225_v2  ;;  %v246_v11 = vrot.slane %v237_v5, %v229_v3 }
  0x15   : > { %v217_v12 = vunpack.c.l.bf16 %v215_v8  ;;  %v218_v13 = vunpack.c.h.bf16 %v215_v8  ;;  %v219_v14 = vunpack.c.l.bf16 %v216_v9  ;;  %v220_v15 = vunpack.c.h.bf16 %v216_v9 }
  0x17   : > { %v233_v16 = vmul.f32 %v226_v6, %v217_v12  ;;  %v234_v17 = vmul.f32 %v230_v7, %v218_v13  ;;  %v235_v18 = vmul.f32 %v226_v6, %v219_v14  ;;  %v236_v19 = vmul.f32 %v230_v7, %v220_v15 }
  0x19   : > { %v249_v20 = vadd.f32 %v242_v10, %v233_v16  ;;  %v250_v21 = vadd.f32 %v246_v11, %v234_v17  ;;  %v251_v22 = vadd.f32 %v242_v10, %v235_v18  ;;  %v252_v23 = vadd.f32 %v246_v11, %v236_v19 }
  0x1b   : > { %v257_v24 = vmin.f32 %v249_v20, 0.0  ;;  %v258_v25 = vmin.f32 %v250_v21, 0.0  ;;  %v259_v26 = vmin.f32 %v251_v22, 0.0  ;;  %v260_v27 = vmin.f32 %v252_v23, 0.0 }
  0x1c   : > { %vm253_vm0 = vcmp.gt.f32.partialorder %v249_v20, 0.0  ;;  %vm254_vm1 = vcmp.gt.f32.partialorder %v250_v21, 0.0  ;;  %vm255_vm2 = vcmp.gt.f32.partialorder %v251_v22, 0.0  ;;  %vm256_vm3 = vcmp.gt.f32.partialorder %v252_v23, 0.0 }
  0x1d   : > { %v261_v28 = vmul.f32 1.442695, %v257_v24  ;;  %v263_v29 = vmul.f32 1.442695, %v258_v25  ;;  %v265_v30 = vmul.f32 1.442695, %v259_v26 }
  0x1e   : > { %v267_v31 = vmul.f32 1.442695, %v260_v27 }
  0x1f   : > { %439 = vpow2.f32 %v261_v28 }
  0x20   : > { %441 = vpow2.f32 %v263_v29 }
  0x21   : > { %443 = vpow2.f32 %v265_v30 }
  0x22   : > { %445 = vpow2.f32 %v267_v31 }
  0x2c   : > { %v440_v32 = vpop.eup %439 }
  0x2d   : > { %v442_v33 = vpop.eup %441  ;;  %v393_v34 = vadd.f32 -1.0, %v440_v32 }
  0x2e   : > { %v444_v35 = vpop.eup %443  ;;  %v394_v36 = vadd.f32 -1.0, %v442_v33 }
  0x2f   : > { %v446_v37 = vpop.eup %445  ;;  %v273_v38 = vsel %vm253_vm0, %v249_v20, %v393_v34  ;;  %v395_v39 = vadd.f32 -1.0, %v444_v35 }
  0x30   : > { %277 = vst [vmem:[%s213_s7] sm:$0xff] %v273_v38  ;;  %v274_v40 = vsel %vm254_vm1, %v250_v21, %v394_v36  ;;  %v396_v41 = vadd.f32 -1.0, %v446_v37 }
  0x31   : > { %278 = vst [vmem:[%s213_s7 + $0x8] sm:$0xff] %v274_v40  ;;  %v275_v42 = vsel %vm255_vm2, %v251_v22, %v395_v39 }
  0x32   : > { %279 = vst [vmem:[%s213_s7 + $0x10] sm:$0xff] %v275_v42  ;;  %v276_v43 = vsel %vm256_vm3, %v252_v23, %v396_v41 }
  0x33   : > { %280 = vst [vmem:[%s213_s7 + $0x18] sm:$0xff] %v276_v43 }
  0x34 PF: > { %s13_s16 = sadd.s32 1, %s485_s16   ;;  %s572_s12 = smov %s477_s14 }
  0x35   : > { %p10_p7 = scmp.ge.s32.totalorder %s13_s16, 6   ;;  %s573_s13 = smov %s481_s15 }
  0x36   : > { %s574_s14 = smov %s577_s17  ;;  %s575_s15 = smov %s581_s18 }
  0x37   :  { %12 = sbr.rel (!%p10_p7) target bundleno = 3 (0x3), region = 62 }

</bundles_post_ra>
